<compile_context>
chip_gen: v7x
topology: tpu7x:2x2x1
jax: 0.10.0
libtpu: 0.0.40
codegen_flags: <defaults>
</compile_context>

<pallas_src>
import jax
import jax.numpy as jnp
from jax.experimental import pallas as pl
from jax.experimental.pallas import tpu as pltpu

BN_EPS = 1e-5   # PyTorch BatchNorm1d default


def _vmem_limit(*arrays, out_bytes=0, headroom=4 << 20):
    """Scoped-VMEM request sized from the actual block bytes (x2 for double-buffering)
    plus headroom for compiler temporaries, instead of a flat per-generation guess."""
    total = sum(int(a.size) * a.dtype.itemsize for a in arrays) + out_bytes
    return int(2 * total + headroom)


# ----------------------------- Pallas kernels ------------------------------ #

def conv_relu_kernel(p_ref, w_ref, b_ref, o_ref):
    """o = relu(patches @ w + b), one whole-array step.

    p:[M, C*9] bf16, w:[C*9, Cout] bf16, b:[1, Cout] f32, o:[M, Cout] bf16.
    K/N stay unpadded in HBM; the MXU pads internally in VMEM.
    """
    acc = jnp.dot(p_ref[...], w_ref[...], preferred_element_type=jnp.float32)
    o_ref[...] = jnp.maximum(acc + b_ref[...], 0.0).astype(o_ref.dtype)


def projection_head_kernel(x_ref, w1_ref, g1_ref, b1_ref,
                           w2_ref, g2_ref, b2_ref,
                           w3_ref, bias3_ref, o_ref):
    """BarlowTwinsProjectionHead, single step, everything VMEM-resident:
       Linear(no bias) -> BN1d (train-mode batch stats, biased var) -> ReLU
       Linear(no bias) -> BN1d -> ReLU
       Linear(with bias)
    """
    def bn_relu(h, gamma, beta):
        mean = jnp.mean(h, axis=0, keepdims=True)
        d = h - mean
        var = jnp.mean(d * d, axis=0, keepdims=True)        # biased (train mode)
        hn = d * jax.lax.rsqrt(var + BN_EPS)
        return jnp.maximum(hn * gamma + beta, 0.0)

    h1 = jnp.dot(x_ref[...], w1_ref[...], preferred_element_type=jnp.float32)
    h1 = bn_relu(h1, g1_ref[...], b1_ref[...])
    h2 = jnp.dot(h1.astype(w2_ref.dtype), w2_ref[...],
                 preferred_element_type=jnp.float32)
    h2 = bn_relu(h2, g2_ref[...], b2_ref[...])
    z = jnp.dot(h2.astype(w3_ref.dtype), w3_ref[...],
                preferred_element_type=jnp.float32) + bias3_ref[...]
    o_ref[...] = z.astype(o_ref.dtype)


# ------------------------------- JAX wrapper -------------------------------- #

def _im2col_3x3_same(x):
    """x: [B, C, H, W] -> patches [B*H*W, C*9], rows ordered (b,h,w), cols (c,kh,kw)."""
    B, C, H, W = x.shape
    xp = jnp.pad(x, ((0, 0), (0, 0), (1, 1), (1, 1)))
    cols = [xp[:, :, dh:dh + H, dw:dw + W] for dh in range(3) for dw in range(3)]
    patches = jnp.stack(cols, axis=2)               # [B, C, 9, H, W]
    patches = patches.transpose(0, 3, 4, 1, 2)      # [B, H, W, C, 9]
    return patches.reshape(B * H * W, C * 9)


def barlow_twins_forward(x, params):
    B, C, H, W = x.shape
    conv_w = params["conv_w"]                       # [Cout, C, 3, 3] (PyTorch layout)
    conv_b = params["conv_b"]                       # [Cout]
    Cout = conv_w.shape[0]
    hidden = params["w1"].shape[1]
    out_dim = params["w3"].shape[1]

    # ---------------- backbone: Conv2d(C, Cout, 3, pad=1) + ReLU -----------------
    K = C * 9
    M = B * H * W
    patches = _im2col_3x3_same(x).astype(jnp.bfloat16)                 # [M, K] unpadded
    w_mat = conv_w.reshape(Cout, K).T.astype(jnp.bfloat16)             # [K, Cout]
    b_mat = conv_b.reshape(1, Cout)                                    # f32

    conv_out = pl.pallas_call(
        conv_relu_kernel,
        out_shape=jax.ShapeDtypeStruct((M, Cout), jnp.bfloat16),
        grid=(1,),
        in_specs=[
            pl.BlockSpec((M, K), lambda i: (0, 0)),        # patches (full array)
            pl.BlockSpec((K, Cout), lambda i: (0, 0)),     # conv weights
            pl.BlockSpec((1, Cout), lambda i: (0, 0)),     # bias
        ],
        out_specs=pl.BlockSpec((M, Cout), lambda i: (0, 0)),
        compiler_params=pltpu.CompilerParams(
            dimension_semantics=("arbitrary",),
            vmem_limit_bytes=_vmem_limit(patches, w_mat, b_mat,
                                         out_bytes=M * Cout * 2),
        ),
    )(patches, w_mat, b_mat)

    # flatten(start_dim=1): conv rows are ordered (b, h, w) with cout minor, so this
    # reshape is contiguous row-major -> free (no transpose, no HBM copy).  PyTorch's
    # NCHW flatten order (cout, h, w) is recovered by permuting w1's rows once below.
    in_dim = Cout * H * W
    feat = conv_out.reshape(B, in_dim)                                 # [B, in_dim] bf16

    w1_hwc = (params["w1"].reshape(Cout, H, W, hidden)                 # rows (cout,h,w)
                .transpose(1, 2, 0, 3)
                .reshape(in_dim, hidden)).astype(jnp.bfloat16)         # rows (h,w,cout)
    w2 = params["w2"].astype(jnp.bfloat16)
    w3 = params["w3"].astype(jnp.bfloat16)
    b3 = params["b3"]                                                  # f32 [1, out_dim]

    # ---------------- projection head (single kernel step, all resident) ---------
    z = pl.pallas_call(
        projection_head_kernel,
        out_shape=jax.ShapeDtypeStruct((B, out_dim), jnp.float32),
        grid=(1,),
        in_specs=[
            pl.BlockSpec((B, in_dim), lambda i: (0, 0)),       # feat
            pl.BlockSpec((in_dim, hidden), lambda i: (0, 0)),  # w1 (row-permuted)
            pl.BlockSpec((1, hidden), lambda i: (0, 0)),       # bn1 gamma
            pl.BlockSpec((1, hidden), lambda i: (0, 0)),       # bn1 beta
            pl.BlockSpec((hidden, hidden), lambda i: (0, 0)),  # w2
            pl.BlockSpec((1, hidden), lambda i: (0, 0)),       # bn2 gamma
            pl.BlockSpec((1, hidden), lambda i: (0, 0)),       # bn2 beta
            pl.BlockSpec((hidden, out_dim), lambda i: (0, 0)),  # w3
            pl.BlockSpec((1, out_dim), lambda i: (0, 0)),       # b3
        ],
        out_specs=pl.BlockSpec((B, out_dim), lambda i: (0, 0)),
        compiler_params=pltpu.CompilerParams(
            dimension_semantics=("arbitrary",),
            vmem_limit_bytes=_vmem_limit(
                feat, w1_hwc, params["bn1_gamma"], params["bn1_beta"],
                w2, params["bn2_gamma"], params["bn2_beta"], w3, b3,
                out_bytes=B * out_dim * 4),
        ),
    )(feat, w1_hwc,
      params["bn1_gamma"], params["bn1_beta"],
      w2, params["bn2_gamma"], params["bn2_beta"],
      w3, b3)

    return z


# ------------------------------ parameter init ------------------------------ #

def init_params(key, in_ch=4, conv_ch=8, h=16, w=16, hidden_dim=128, out_dim=64):
    in_dim = conv_ch * h * w
    k = jax.random.split(key, 6)
    return {
        # backbone conv
        "conv_w": 0.05 * jax.random.normal(k[0], (conv_ch, in_ch, 3, 3), jnp.float32),
        "conv_b": 0.01 * jax.random.normal(k[1], (conv_ch,), jnp.float32),
        # head layer 1 (Linear no bias + BN + ReLU); weights stored [in, out], rows
        # ordered like PyTorch's flatten of the NCHW feature map: (cout, h, w).
        "w1": 0.02 * jax.random.normal(k[2], (in_dim, hidden_dim), jnp.float32),
        "bn1_gamma": jnp.ones((1, hidden_dim), jnp.float32),
        "bn1_beta": jnp.zeros((1, hidden_dim), jnp.float32),
        # head layer 2 (Linear no bias + BN + ReLU)
        "w2": 0.02 * jax.random.normal(k[3], (hidden_dim, hidden_dim), jnp.float32),
        "bn2_gamma": jnp.ones((1, hidden_dim), jnp.float32),
        "bn2_beta": jnp.zeros((1, hidden_dim), jnp.float32),
        # head layer 3 (Linear with bias, no BN/ReLU)
        "w3": 0.02 * jax.random.normal(k[4], (hidden_dim, out_dim), jnp.float32),
        "b3": 0.01 * jax.random.normal(k[5], (1, out_dim), jnp.float32),
    }


if __name__ == "__main__":
    key = jax.random.PRNGKey(0)
    k_x, k_p = jax.random.split(key)

    B, C, H, W = 2, 4, 16, 16
    x = jax.random.normal(k_x, (B, C, H, W), jnp.float32)   # NCHW, like PyTorch
    params = init_params(k_p, in_ch=C, conv_ch=8, h=H, w=W, hidden_dim=128, out_dim=64)

    z = jax.jit(barlow_twins_forward)(x, params)
    jax.block_until_ready(z)
    assert z.shape == (B, 64) and z.dtype == jnp.float32
    assert bool(jnp.all(jnp.isfinite(z)))
    print("KERNEL_OK")
</pallas_src>

<mosaic_0001>
module attributes {stable_mosaic.version = 11 : i64} {
  func.func @conv_relu_kernel(%arg0: i32, %arg1: memref<512x36xbf16, #tpu.memory_space<vmem>>, %arg2: memref<36x8xbf16, #tpu.memory_space<vmem>>, %arg3: memref<1x8xf32, #tpu.memory_space<vmem>>, %arg4: memref<512x8xbf16, #tpu.memory_space<vmem>>) attributes {dimension_semantics = [#tpu.dimension_semantics<arbitrary>], iteration_bounds = array<i64: 1>, scalar_prefetch = 0 : i64, scratch_operands = 0 : i64, tpu.core_type = #tpu.core_type<tc>, window_params = [{pipeline_mode = #tpu.pipeline_mode<synchronous>, transform_indices = @transform_0, window_bounds = array<i64: 512, 36>}, {pipeline_mode = #tpu.pipeline_mode<synchronous>, transform_indices = @transform_1, window_bounds = array<i64: 36, 8>}, {pipeline_mode = #tpu.pipeline_mode<synchronous>, transform_indices = @transform_2, window_bounds = array<i64: 1, 8>}, {pipeline_mode = #tpu.pipeline_mode<synchronous>, transform_indices = @transform_3, window_bounds = array<i64: 512, 8>}]} {
    %c0 = arith.constant 0 : index
    %c0_0 = arith.constant 0 : index
    %0 = vector.load %arg1[%c0, %c0_0] : memref<512x36xbf16, #tpu.memory_space<vmem>>, vector<512x36xbf16>
    %c0_1 = arith.constant 0 : index
    %c0_2 = arith.constant 0 : index
    %1 = vector.load %arg2[%c0_1, %c0_2] : memref<36x8xbf16, #tpu.memory_space<vmem>>, vector<36x8xbf16>
    %cst = arith.constant dense<0.000000e+00> : vector<512x8xf32>
    %2 = tpu.matmul %0, %1, %cst {dimension_numbers = #tpu.dot_dimension_numbers<[1], [0], [0], [1], [0, 0, 1, 1], [], []>} : vector<512x36xbf16>, vector<36x8xbf16>, vector<512x8xf32> -> vector<512x8xf32>
    %c0_3 = arith.constant 0 : index
    %c0_4 = arith.constant 0 : index
    %3 = vector.load %arg3[%c0_3, %c0_4] : memref<1x8xf32, #tpu.memory_space<vmem>>, vector<1x8xf32>
    %4 = vector.broadcast %3 : vector<1x8xf32> to vector<512x8xf32>
    %5 = arith.addf %2, %4 : vector<512x8xf32>
    %cst_5 = arith.constant 0.000000e+00 : f32
    %6 = vector.broadcast %cst_5 : f32 to vector<512x8xf32>
    %7 = arith.maximumf %5, %6 : vector<512x8xf32>
    %8 = arith.truncf %7 : vector<512x8xf32> to vector<512x8xbf16>
    %c0_6 = arith.constant 0 : index
    %c0_7 = arith.constant 0 : index
    %9 = vector.load %arg4[%c0_6, %c0_7] : memref<512x8xbf16, #tpu.memory_space<vmem>>, vector<512x8xbf16>
    tpu.vector_store %arg4[%c0_6, %c0_7], %8 {strides = array<i32>} : memref<512x8xbf16, #tpu.memory_space<vmem>>, vector<512x8xbf16>,
    return
  }
  func.func @transform_0(%arg0: i32) -> (i32, i32) {
    %c0_i32 = arith.constant 0 : i32
    %c0_i32_0 = arith.constant 0 : i32
    %c0_i32_1 = arith.constant 0 : i32
    return %c0_i32, %c0_i32_0 : i32, i32
  }
  func.func @transform_1(%arg0: i32) -> (i32, i32) {
    %c0_i32 = arith.constant 0 : i32
    %c0_i32_0 = arith.constant 0 : i32
    %c0_i32_1 = arith.constant 0 : i32
    return %c0_i32, %c0_i32_0 : i32, i32
  }
  func.func @transform_2(%arg0: i32) -> (i32, i32) {
    %c0_i32 = arith.constant 0 : i32
    %c0_i32_0 = arith.constant 0 : i32
    %c0_i32_1 = arith.constant 0 : i32
    return %c0_i32, %c0_i32_0 : i32, i32
  }
  func.func @transform_3(%arg0: i32) -> (i32, i32) {
    %c0_i32 = arith.constant 0 : i32
    %c0_i32_0 = arith.constant 0 : i32
    %c0_i32_1 = arith.constant 0 : i32
    return %c0_i32, %c0_i32_0 : i32, i32
  }
}

module attributes {stable_mosaic.version = 11 : i64} {
  func.func @projection_head_kernel(%arg0: i32, %arg1: memref<2x2048xbf16, #tpu.memory_space<vmem>>, %arg2: memref<2048x128xbf16, #tpu.memory_space<vmem>>, %arg3: memref<1x128xf32, #tpu.memory_space<vmem>>, %arg4: memref<1x128xf32, #tpu.memory_space<vmem>>, %arg5: memref<128x128xbf16, #tpu.memory_space<vmem>>, %arg6: memref<1x128xf32, #tpu.memory_space<vmem>>, %arg7: memref<1x128xf32, #tpu.memory_space<vmem>>, %arg8: memref<128x64xbf16, #tpu.memory_space<vmem>>, %arg9: memref<1x64xf32, #tpu.memory_space<vmem>>, %arg10: memref<2x64xf32, #tpu.memory_space<vmem>>) attributes {dimension_semantics = [#tpu.dimension_semantics<arbitrary>], iteration_bounds = array<i64: 1>, scalar_prefetch = 0 : i64, scratch_operands = 0 : i64, tpu.core_type = #tpu.core_type<tc>, window_params = [{pipeline_mode = #tpu.pipeline_mode<synchronous>, transform_indices = @transform_0, window_bounds = array<i64: 2, 2048>}, {pipeline_mode = #tpu.pipeline_mode<synchronous>, transform_indices = @transform_1, window_bounds = array<i64: 2048, 128>}, {pipeline_mode = #tpu.pipeline_mode<synchronous>, transform_indices = @transform_2, window_bounds = array<i64: 1, 128>}, {pipeline_mode = #tpu.pipeline_mode<synchronous>, transform_indices = @transform_3, window_bounds = array<i64: 1, 128>}, {pipeline_mode = #tpu.pipeline_mode<synchronous>, transform_indices = @transform_4, window_bounds = array<i64: 128, 128>}, {pipeline_mode = #tpu.pipeline_mode<synchronous>, transform_indices = @transform_5, window_bounds = array<i64: 1, 128>}, {pipeline_mode = #tpu.pipeline_mode<synchronous>, transform_indices = @transform_6, window_bounds = array<i64: 1, 128>}, {pipeline_mode = #tpu.pipeline_mode<synchronous>, transform_indices = @transform_7, window_bounds = array<i64: 128, 64>}, {pipeline_mode = #tpu.pipeline_mode<synchronous>, transform_indices = @transform_8, window_bounds = array<i64: 1, 64>}, {pipeline_mode = #tpu.pipeline_mode<synchronous>, transform_indices = @transform_9, window_bounds = array<i64: 2, 64>}]} {
    %c0 = arith.constant 0 : index
    %c0_0 = arith.constant 0 : index
    %0 = vector.load %arg1[%c0, %c0_0] : memref<2x2048xbf16, #tpu.memory_space<vmem>>, vector<2x2048xbf16>
    %c0_1 = arith.constant 0 : index
    %c0_2 = arith.constant 0 : index
    %1 = vector.load %arg2[%c0_1, %c0_2] : memref<2048x128xbf16, #tpu.memory_space<vmem>>, vector<2048x128xbf16>
    %cst = arith.constant dense<0.000000e+00> : vector<2x128xf32>
    %2 = tpu.matmul %0, %1, %cst {dimension_numbers = #tpu.dot_dimension_numbers<[1], [0], [0], [1], [0, 0, 1, 1], [], []>} : vector<2x2048xbf16>, vector<2048x128xbf16>, vector<2x128xf32> -> vector<2x128xf32>
    %c0_3 = arith.constant 0 : index
    %c0_4 = arith.constant 0 : index
    %3 = vector.load %arg3[%c0_3, %c0_4] : memref<1x128xf32, #tpu.memory_space<vmem>>, vector<1x128xf32>
    %c0_5 = arith.constant 0 : index
    %c0_6 = arith.constant 0 : index
    %4 = vector.load %arg4[%c0_5, %c0_6] : memref<1x128xf32, #tpu.memory_space<vmem>>, vector<1x128xf32>
    %cst_7 = arith.constant dense<0.000000e+00> : vector<128xf32>
    %5 = vector.multi_reduction <add>, %2, %cst_7 [0] : vector<2x128xf32> to vector<128xf32>
    %6 = vector.shape_cast %5 : vector<128xf32> to vector<1x128xf32>
    %cst_8 = arith.constant 2.000000e+00 : f32
    %7 = vector.broadcast %cst_8 : f32 to vector<1x128xf32>
    %8 = arith.divf %6, %7 : vector<1x128xf32>
    %9 = vector.broadcast %8 : vector<1x128xf32> to vector<2x128xf32>
    %10 = arith.subf %2, %9 : vector<2x128xf32>
    %11 = arith.mulf %10, %10 : vector<2x128xf32>
    %cst_9 = arith.constant dense<0.000000e+00> : vector<128xf32>
    %12 = vector.multi_reduction <add>, %11, %cst_9 [0] : vector<2x128xf32> to vector<128xf32>
    %13 = vector.shape_cast %12 : vector<128xf32> to vector<1x128xf32>
    %cst_10 = arith.constant 2.000000e+00 : f32
    %14 = vector.broadcast %cst_10 : f32 to vector<1x128xf32>
    %15 = arith.divf %13, %14 : vector<1x128xf32>
    %cst_11 = arith.constant 9.99999974E-6 : f32
    %16 = vector.broadcast %cst_11 : f32 to vector<1x128xf32>
    %17 = arith.addf %15, %16 : vector<1x128xf32>
    %18 = math.rsqrt %17 : vector<1x128xf32>
    %19 = vector.broadcast %18 : vector<1x128xf32> to vector<2x128xf32>
    %20 = arith.mulf %10, %19 : vector<2x128xf32>
    %21 = vector.broadcast %3 : vector<1x128xf32> to vector<2x128xf32>
    %22 = arith.mulf %20, %21 : vector<2x128xf32>
    %23 = vector.broadcast %4 : vector<1x128xf32> to vector<2x128xf32>
    %24 = arith.addf %22, %23 : vector<2x128xf32>
    %cst_12 = arith.constant 0.000000e+00 : f32
    %25 = vector.broadcast %cst_12 : f32 to vector<2x128xf32>
    %26 = arith.maximumf %24, %25 : vector<2x128xf32>
    %27 = arith.truncf %26 : vector<2x128xf32> to vector<2x128xbf16>
    %c0_13 = arith.constant 0 : index
    %c0_14 = arith.constant 0 : index
    %28 = vector.load %arg5[%c0_13, %c0_14] : memref<128x128xbf16, #tpu.memory_space<vmem>>, vector<128x128xbf16>
    %cst_15 = arith.constant dense<0.000000e+00> : vector<2x128xf32>
    %29 = tpu.matmul %27, %28, %cst_15 {dimension_numbers = #tpu.dot_dimension_numbers<[1], [0], [0], [1], [0, 0, 1, 1], [], []>} : vector<2x128xbf16>, vector<128x128xbf16>, vector<2x128xf32> -> vector<2x128xf32>
    %c0_16 = arith.constant 0 : index
    %c0_17 = arith.constant 0 : index
    %30 = vector.load %arg6[%c0_16, %c0_17] : memref<1x128xf32, #tpu.memory_space<vmem>>, vector<1x128xf32>
    %c0_18 = arith.constant 0 : index
    %c0_19 = arith.constant 0 : index
    %31 = vector.load %arg7[%c0_18, %c0_19] : memref<1x128xf32, #tpu.memory_space<vmem>>, vector<1x128xf32>
    %cst_20 = arith.constant dense<0.000000e+00> : vector<128xf32>
    %32 = vector.multi_reduction <add>, %29, %cst_20 [0] : vector<2x128xf32> to vector<128xf32>
    %33 = vector.shape_cast %32 : vector<128xf32> to vector<1x128xf32>
    %cst_21 = arith.constant 2.000000e+00 : f32
    %34 = vector.broadcast %cst_21 : f32 to vector<1x128xf32>
    %35 = arith.divf %33, %34 : vector<1x128xf32>
    %36 = vector.broadcast %35 : vector<1x128xf32> to vector<2x128xf32>
    %37 = arith.subf %29, %36 : vector<2x128xf32>
    %38 = arith.mulf %37, %37 : vector<2x128xf32>
    %cst_22 = arith.constant dense<0.000000e+00> : vector<128xf32>
    %39 = vector.multi_reduction <add>, %38, %cst_22 [0] : vector<2x128xf32> to vector<128xf32>
    %40 = vector.shape_cast %39 : vector<128xf32> to vector<1x128xf32>
    %cst_23 = arith.constant 2.000000e+00 : f32
    %41 = vector.broadcast %cst_23 : f32 to vector<1x128xf32>
    %42 = arith.divf %40, %41 : vector<1x128xf32>
    %cst_24 = arith.constant 9.99999974E-6 : f32
    %43 = vector.broadcast %cst_24 : f32 to vector<1x128xf32>
    %44 = arith.addf %42, %43 : vector<1x128xf32>
    %45 = math.rsqrt %44 : vector<1x128xf32>
    %46 = vector.broadcast %45 : vector<1x128xf32> to vector<2x128xf32>
    %47 = arith.mulf %37, %46 : vector<2x128xf32>
    %48 = vector.broadcast %30 : vector<1x128xf32> to vector<2x128xf32>
    %49 = arith.mulf %47, %48 : vector<2x128xf32>
    %50 = vector.broadcast %31 : vector<1x128xf32> to vector<2x128xf32>
    %51 = arith.addf %49, %50 : vector<2x128xf32>
    %cst_25 = arith.constant 0.000000e+00 : f32
    %52 = vector.broadcast %cst_25 : f32 to vector<2x128xf32>
    %53 = arith.maximumf %51, %52 : vector<2x128xf32>
    %54 = arith.truncf %53 : vector<2x128xf32> to vector<2x128xbf16>
    %c0_26 = arith.constant 0 : index
    %c0_27 = arith.constant 0 : index
    %55 = vector.load %arg8[%c0_26, %c0_27] : memref<128x64xbf16, #tpu.memory_space<vmem>>, vector<128x64xbf16>
    %cst_28 = arith.constant dense<0.000000e+00> : vector<2x64xf32>
    %56 = tpu.matmul %54, %55, %cst_28 {dimension_numbers = #tpu.dot_dimension_numbers<[1], [0], [0], [1], [0, 0, 1, 1], [], []>} : vector<2x128xbf16>, vector<128x64xbf16>, vector<2x64xf32> -> vector<2x64xf32>
    %c0_29 = arith.constant 0 : index
    %c0_30 = arith.constant 0 : index
    %57 = vector.load %arg9[%c0_29, %c0_30] : memref<1x64xf32, #tpu.memory_space<vmem>>, vector<1x64xf32>
    %58 = vector.broadcast %57 : vector<1x64xf32> to vector<2x64xf32>
    %59 = arith.addf %56, %58 : vector<2x64xf32>
    %c0_31 = arith.constant 0 : index
    %c0_32 = arith.constant 0 : index
    %60 = vector.load %arg10[%c0_31, %c0_32] : memref<2x64xf32, #tpu.memory_space<vmem>>, vector<2x64xf32>
    tpu.vector_store %arg10[%c0_31, %c0_32], %59 {strides = array<i32>} : memref<2x64xf32, #tpu.memory_space<vmem>>, vector<2x64xf32>,
    return
  }
  func.func @transform_0(%arg0: i32) -> (i32, i32) {
    %c0_i32 = arith.constant 0 : i32
    %c0_i32_0 = arith.constant 0 : i32
    %c0_i32_1 = arith.constant 0 : i32
    return %c0_i32, %c0_i32_0 : i32, i32
  }
  func.func @transform_1(%arg0: i32) -> (i32, i32) {
    %c0_i32 = arith.constant 0 : i32
    %c0_i32_0 = arith.constant 0 : i32
    %c0_i32_1 = arith.constant 0 : i32
    return %c0_i32, %c0_i32_0 : i32, i32
  }
  func.func @transform_2(%arg0: i32) -> (i32, i32) {
    %c0_i32 = arith.constant 0 : i32
    %c0_i32_0 = arith.constant 0 : i32
    %c0_i32_1 = arith.constant 0 : i32
    return %c0_i32, %c0_i32_0 : i32, i32
  }
  func.func @transform_3(%arg0: i32) -> (i32, i32) {
    %c0_i32 = arith.constant 0 : i32
    %c0_i32_0 = arith.constant 0 : i32
    %c0_i32_1 = arith.constant 0 : i32
    return %c0_i32, %c0_i32_0 : i32, i32
  }
  func.func @transform_4(%arg0: i32) -> (i32, i32) {
    %c0_i32 = arith.constant 0 : i32
    %c0_i32_0 = arith.constant 0 : i32
    %c0_i32_1 = arith.constant 0 : i32
    return %c0_i32, %c0_i32_0 : i32, i32
  }
  func.func @transform_5(%arg0: i32) -> (i32, i32) {
    %c0_i32 = arith.constant 0 : i32
    %c0_i32_0 = arith.constant 0 : i32
    %c0_i32_1 = arith.constant 0 : i32
    return %c0_i32, %c0_i32_0 : i32, i32
  }
  func.func @transform_6(%arg0: i32) -> (i32, i32) {
    %c0_i32 = arith.constant 0 : i32
    %c0_i32_0 = arith.constant 0 : i32
    %c0_i32_1 = arith.constant 0 : i32
    return %c0_i32, %c0_i32_0 : i32, i32
  }
  func.func @transform_7(%arg0: i32) -> (i32, i32) {
    %c0_i32 = arith.constant 0 : i32
    %c0_i32_0 = arith.constant 0 : i32
    %c0_i32_1 = arith.constant 0 : i32
    return %c0_i32, %c0_i32_0 : i32, i32
  }
  func.func @transform_8(%arg0: i32) -> (i32, i32) {
    %c0_i32 = arith.constant 0 : i32
    %c0_i32_0 = arith.constant 0 : i32
    %c0_i32_1 = arith.constant 0 : i32
    return %c0_i32, %c0_i32_0 : i32, i32
  }
  func.func @transform_9(%arg0: i32) -> (i32, i32) {
    %c0_i32 = arith.constant 0 : i32
    %c0_i32_0 = arith.constant 0 : i32
    %c0_i32_1 = arith.constant 0 : i32
    return %c0_i32, %c0_i32_0 : i32, i32
  }
}

</mosaic_0001>

<bundles_post_ra>
// kernel: barlow_twins_forward.2
= control target key start
LH: loop header
LB: loop body
LE: loop exit
PB: predicated region body
PF: predicated region fallthrough
CT: control target
= control target key end

     0   :  { %vm266_vm0 = vcmask 293888   ;;  %vm363_vm1 = vcmask 1041408   ;;  %vm976_vm2 = vcmask 60416   ;;  %s1871_s1 = inlined_call_operand.vmem [shape: bf16[36,8], index: 1, kind: input, shape index: {}]   ;;  %s1872_s0 = inlined_call_operand.vmem [shape: bf16[512,36], index: 0, kind: input, shape index: {}]   ;;  %s1873_s2 = inlined_call_operand.vmem [shape: f32[1,8], index: 2, kind: input, shape index: {}]   ;;  %s1874_s3 = inlined_call_operand.vmem [shape: bf16[512,8], index: 3, kind: output, shape index: {}]  }
   0x1   :  { %v1354_v0 = vld [vmem:[%s1871_s1] sm:$0xff]   ;;  %v1355_v1 = vld [vmem:[%s1871_s1 + $0x8] sm:$0xff]   ;;  %v1356_v2 = vld [vmem:[%s1871_s1 + $0x10] ss:$0 sps:$4 sm:$0x33]  }
   0x2   :  { %1276 = vmatprep.subr.bf16.mxu0 %v1354_v0  ;;  %1346 = vmatprep.subr.bf16.mxu1 %v1354_v0  ;;  %v1357_v3 = vld [vmem:[%s1872_s0] sm:$0xff]   ;;  %v365_v5 = vsel %vm363_vm1, %v1356_v2, 0  ;;  %v1359_v6 = vld [vmem:[%s1872_s0 + $0x8] sm:$0xff]   ;;  %v1361_v8 = vld [vmem:[%s1872_s0 + $0x10] sm:$0xff]  }
   0x3   :  { %1277 = vmatpush3.bf16.msra.mxu0 %v1354_v0  ;;  %1349 = vmatpush3.bf16.msra.mxu1 %v1354_v0  ;;  %v1358_v4 = vld [vmem:[%s1872_s0 + $0x80] sm:$0xff]   ;;  %v1360_v7 = vld [vmem:[%s1872_s0 + $0x88] sm:$0xff]   ;;  %v1362_v9 = vld [vmem:[%s1872_s0 + $0x90] sm:$0xff]  }
   0x4   :  { %1278 = vmatprep.subr.bf16.mxu0 %v1355_v1  ;;  %1347 = vmatprep.subr.bf16.mxu1 %v1355_v1  ;;  %v1363_v10 = vld [vmem:[%s1872_s0 + $0x18] sm:$0xff]   ;;  %v1365_v12 = vld [vmem:[%s1872_s0 + $0x20] sm:$0xff]   ;;  %v1367_v14 = vld [vmem:[%s1872_s0 + $0x28] sm:$0xff]  }
   0x5   :  { %1282 = vmatprep.mubr.msk.bf16.mxu0 %vm266_vm0, %v1357_v3  ;;  %1314 = vmatprep.mubr.msk.bf16.mxu1 %vm266_vm0, %v1358_v4  ;;  %v1364_v11 = vld [vmem:[%s1872_s0 + $0x98] sm:$0xff]   ;;  %v1366_v13 = vld [vmem:[%s1872_s0 + $0xa0] sm:$0xff]   ;;  %v1368_v15 = vld [vmem:[%s1872_s0 + $0xa8] sm:$0xff]  }
   0x6   :  { %v1369_v16 = vld [vmem:[%s1872_s0 + $0x30] sm:$0xff]   ;;  %v1371_v18 = vld [vmem:[%s1872_s0 + $0x38] sm:$0xff]   ;;  %v1373_v20 = vld [vmem:[%s1872_s0 + $0x40] sm:$0xff]  }
   0x7   :  { %1279 = vmatpush3.bf16.msra.mxu0 %v1355_v1  ;;  %1350 = vmatpush3.bf16.msra.mxu1 %v1355_v1  ;;  %v1370_v17 = vld [vmem:[%s1872_s0 + $0xb0] sm:$0xff]   ;;  %v1372_v19 = vld [vmem:[%s1872_s0 + $0xb8] sm:$0xff]   ;;  %v1374_v21 = vld [vmem:[%s1872_s0 + $0xc0] sm:$0xff]  }
   0x8   :  { %1352 = vmatprep.subr.msk.bf16.mxu0 %vm363_vm1, %v1356_v2  ;;  %1353 = vmatprep.subr.msk.bf16.mxu1 %vm363_vm1, %v1356_v2  ;;  %v1375_v22 = vld [vmem:[%s1872_s0 + $0x48] sm:$0xff]   ;;  %v1377_v24 = vld [vmem:[%s1872_s0 + $0x50] sm:$0xff]   ;;  %v1379_v26 = vld [vmem:[%s1872_s0 + $0x58] sm:$0xff]  }
   0x9   :  { %v1376_v23 = vld [vmem:[%s1872_s0 + $0xc8] sm:$0xff]   ;;  %v1378_v25 = vld [vmem:[%s1872_s0 + $0xd0] sm:$0xff]   ;;  %v1380_v27 = vld [vmem:[%s1872_s0 + $0xd8] sm:$0xff]  }
   0xa   :  { %v1381_v28 = vld [vmem:[%s1872_s0 + $0x60] sm:$0xff]   ;;  %v1383_v30 = vld [vmem:[%s1872_s0 + $0x68] sm:$0xff]   ;;  %v1385_v32 = vld [vmem:[%s1872_s0 + $0x70] sm:$0xff]  }
   0xb   :  { %1281 = vmatpush3.bf16.msra.mxu0 %v365_v5  ;;  %1351 = vmatpush3.bf16.msra.mxu1 %v365_v5  ;;  %v1382_v29 = vld [vmem:[%s1872_s0 + $0xe0] sm:$0xff]   ;;  %v1384_v31 = vld [vmem:[%s1872_s0 + $0xe8] sm:$0xff]   ;;  %v1386_v33 = vld [vmem:[%s1872_s0 + $0xf0] sm:$0xff]  }
   0xc   :  { %v1387_v34 = vld [vmem:[%s1872_s0 + $0x78] sm:$0xff]   ;;  %v1549_v36 = vld [vmem:[%s1873_s2] ss:$0 sm:$0xff] }
   0xd   :  { %v1388_v35 = vld [vmem:[%s1872_s0 + $0xf8] sm:$0xff]  }
   0xe   :  { %1283 = vmatmul.mubr.msk.bf16.vlgmr.msra.gmra.mrb[0].mxu0 %vm266_vm0, %v1359_v6  ;;  %1315 = vmatmul.mubr.msk.bf16.vlgmr.msra.gmra.mrb[0].mxu1 %vm266_vm0, %v1360_v7 }
   0xf   :  { %1286 = vmatprep.mubr.msk.bf16.mxu0 %vm266_vm0, %v1361_v8  ;;  %1318 = vmatprep.mubr.msk.bf16.mxu1 %vm266_vm0, %v1362_v9 }
  0x16   :  { %1287 = vmatmul.mubr.msk.bf16.gmra.mrb[4].mxu0 %vm266_vm0, %v1363_v10  ;;  %1319 = vmatmul.mubr.msk.bf16.gmra.mrb[4].mxu1 %vm266_vm0, %v1364_v11 }
  0x17   :  { %1290 = vmatprep.mubr.msk.bf16.mxu0 %vm266_vm0, %v1365_v12  ;;  %1322 = vmatprep.mubr.msk.bf16.mxu1 %vm266_vm0, %v1366_v13 }
  0x1e   :  { %1291 = vmatmul.mubr.msk.bf16.gmra.mrb[8].mxu0 %vm266_vm0, %v1367_v14  ;;  %1323 = vmatmul.mubr.msk.bf16.gmra.mrb[8].mxu1 %vm266_vm0, %v1368_v15 }
  0x1f   :  { %1294 = vmatprep.mubr.msk.bf16.mxu0 %vm266_vm0, %v1369_v16  ;;  %1326 = vmatprep.mubr.msk.bf16.mxu1 %vm266_vm0, %v1370_v17 }
  0x26   :  { %1295 = vmatmul.mubr.msk.bf16.gmra.mrb[12].mxu0 %vm266_vm0, %v1371_v18  ;;  %1327 = vmatmul.mubr.msk.bf16.gmra.mrb[12].mxu1 %vm266_vm0, %v1372_v19 }
  0x27   :  { %1298 = vmatprep.mubr.msk.bf16.mxu0 %vm266_vm0, %v1373_v20  ;;  %1330 = vmatprep.mubr.msk.bf16.mxu1 %vm266_vm0, %v1374_v21 }
  0x2e   :  { %1299 = vmatmul.mubr.msk.bf16.gmra.mrb[16].mxu0 %vm266_vm0, %v1375_v22  ;;  %1331 = vmatmul.mubr.msk.bf16.gmra.mrb[16].mxu1 %vm266_vm0, %v1376_v23 }
  0x2f   :  { %1302 = vmatprep.mubr.msk.bf16.mxu0 %vm266_vm0, %v1377_v24  ;;  %1334 = vmatprep.mubr.msk.bf16.mxu1 %vm266_vm0, %v1378_v25 }
  0x36   :  { %1303 = vmatmul.mubr.msk.bf16.gmra.mrb[20].mxu0 %vm266_vm0, %v1379_v26  ;;  %1335 = vmatmul.mubr.msk.bf16.gmra.mrb[20].mxu1 %vm266_vm0, %v1380_v27 }
  0x37   :  { %1306 = vmatprep.mubr.msk.bf16.mxu0 %vm266_vm0, %v1381_v28  ;;  %1338 = vmatprep.mubr.msk.bf16.mxu1 %vm266_vm0, %v1382_v29 }
  0x3e   :  { %1307 = vmatmul.mubr.msk.bf16.gmra.mrb[24].mxu0 %vm266_vm0, %v1383_v30  ;;  %1339 = vmatmul.mubr.msk.bf16.gmra.mrb[24].mxu1 %vm266_vm0, %v1384_v31 }
  0x3f   :  { %1310 = vmatprep.mubr.msk.bf16.mxu0 %vm266_vm0, %v1385_v32  ;;  %1342 = vmatprep.mubr.msk.bf16.mxu1 %vm266_vm0, %v1386_v33 }
  0x46   :  { %1311 = vmatmul.mubr.msk.bf16.gmra.mrb[28].mxu0 %vm266_vm0, %v1387_v34  ;;  %1343 = vmatmul.mubr.msk.bf16.gmra.mrb[28].mxu1 %vm266_vm0, %v1388_v35 }
  0xe1   :  { %v1284_v37 = vpop.f32.mrb[0].mxu0  ;;  %v1316_v38 = vpop.f32.mrb[0].mxu1 }
  0xe2   :  { %v410_v39 = vadd.f32 %v1284_v37, %v1549_v36  ;;  %v538_v40 = vadd.f32 %v1316_v38, %v1549_v36  ;;  %v401_v41 = vpop.f32.mrb[1].mxu0  ;;  %v529_v42 = vpop.f32.mrb[1].mxu1 }
  0xe3   :  { %v402_v43 = vadd.f32 %v1549_v36, %v401_v41  ;;  %v530_v44 = vadd.f32 %v1549_v36, %v529_v42  ;;  %v1285_v45 = vpop.f32.mrb[2].mxu0  ;;  %v1317_v46 = vpop.f32.mrb[2].mxu1 }
  0xe4   :  { %v658_v47 = vmax.f32 %v410_v39, 0.0  ;;  %v690_v48 = vmax.f32 %v538_v40, 0.0  ;;  %v413_v49 = vadd.f32 %v1285_v45, %v1549_v36  ;;  %v541_v50 = vadd.f32 %v1317_v46, %v1549_v36  ;;  %v404_v51 = vpop.f32.mrb[3].mxu0  ;;  %v532_v52 = vpop.f32.mrb[3].mxu1 }
  0xe5   :  { %v656_v53 = vmax.f32 %v402_v43, 0.0  ;;  %v688_v54 = vmax.f32 %v530_v44, 0.0  ;;  %v405_v55 = vadd.f32 %v1549_v36, %v404_v51  ;;  %v533_v56 = vadd.f32 %v1549_v36, %v532_v52 }
  0xe6   :  { %v1179_v57 = vpack.c.bf16 %v658_v47, %v658_v47  ;;  %v1211_v58 = vpack.c.bf16 %v690_v48, %v690_v48  ;;  %v659_v59 = vmax.f32 %v413_v49, 0.0  ;;  %v691_v60 = vmax.f32 %v541_v50, 0.0 }
  0xe7   :  { %v1177_v61 = vpack.c.bf16 %v656_v53, %v656_v53  ;;  %v1209_v62 = vpack.c.bf16 %v688_v54, %v688_v54  ;;  %v657_v63 = vmax.f32 %v405_v55, 0.0  ;;  %v689_v0 = vmax.f32 %v533_v56, 0.0 }
  0xe8   :  { %979 = vst.msk [vmem:[%s1874_s3 + $0x8] sm:$0xf] %vm976_vm2, %v1179_v57  ;;  %1011 = vst.msk [vmem:[%s1874_s3 + $0x88] sm:$0xf] %vm976_vm2, %v1211_v58  ;;  %v1180_v1 = vpack.c.bf16 %v659_v59, %v659_v59  ;;  %v1212_v2 = vpack.c.bf16 %v691_v60, %v691_v60 }
  0xe9   :  { %977 = vst.msk [vmem:[%s1874_s3] sm:$0xf] %vm976_vm2, %v1177_v61  ;;  %1009 = vst.msk [vmem:[%s1874_s3 + $0x80] sm:$0xf] %vm976_vm2, %v1209_v62  ;;  %v1178_v3 = vpack.c.bf16 %v657_v63, %v657_v63  ;;  %v1210_v4 = vpack.c.bf16 %v689_v0, %v689_v0  ;;  %v1288_v5 = vpop.f32.mrb[4].mxu0  ;;  %v1320_v6 = vpop.f32.mrb[4].mxu1 }
  0xea   :  { %980 = vst.msk [vmem:[%s1874_s3 + $0xc] sm:$0xf] %vm976_vm2, %v1180_v1  ;;  %1012 = vst.msk [vmem:[%s1874_s3 + $0x8c] sm:$0xf] %vm976_vm2, %v1212_v2  ;;  %v426_v7 = vadd.f32 %v1288_v5, %v1549_v36  ;;  %v554_v8 = vadd.f32 %v1320_v6, %v1549_v36  ;;  %v417_v9 = vpop.f32.mrb[5].mxu0  ;;  %v545_v10 = vpop.f32.mrb[5].mxu1 }
  0xeb   :  { %978 = vst.msk [vmem:[%s1874_s3 + $0x4] sm:$0xf] %vm976_vm2, %v1178_v3  ;;  %1010 = vst.msk [vmem:[%s1874_s3 + $0x84] sm:$0xf] %vm976_vm2, %v1210_v4  ;;  %v418_v11 = vadd.f32 %v1549_v36, %v417_v9  ;;  %v546_v12 = vadd.f32 %v1549_v36, %v545_v10  ;;  %v1289_v13 = vpop.f32.mrb[6].mxu0  ;;  %v1321_v14 = vpop.f32.mrb[6].mxu1 }
  0xec   :  { %v662_v15 = vmax.f32 %v426_v7, 0.0  ;;  %v694_v16 = vmax.f32 %v554_v8, 0.0  ;;  %v429_v17 = vadd.f32 %v1289_v13, %v1549_v36  ;;  %v557_v18 = vadd.f32 %v1321_v14, %v1549_v36  ;;  %v420_v19 = vpop.f32.mrb[7].mxu0  ;;  %v548_v20 = vpop.f32.mrb[7].mxu1 }
  0xed   :  { %v660_v21 = vmax.f32 %v418_v11, 0.0  ;;  %v692_v22 = vmax.f32 %v546_v12, 0.0  ;;  %v421_v23 = vadd.f32 %v1549_v36, %v420_v19  ;;  %v549_v24 = vadd.f32 %v1549_v36, %v548_v20 }
  0xee   :  { %v1183_v25 = vpack.c.bf16 %v662_v15, %v662_v15  ;;  %v1215_v26 = vpack.c.bf16 %v694_v16, %v694_v16  ;;  %v663_v27 = vmax.f32 %v429_v17, 0.0  ;;  %v695_v28 = vmax.f32 %v557_v18, 0.0 }
  0xef   :  { %v1181_v29 = vpack.c.bf16 %v660_v21, %v660_v21  ;;  %v1213_v30 = vpack.c.bf16 %v692_v22, %v692_v22  ;;  %v661_v31 = vmax.f32 %v421_v23, 0.0  ;;  %v693_v32 = vmax.f32 %v549_v24, 0.0 }
  0xf0   :  { %983 = vst.msk [vmem:[%s1874_s3 + $0x18] sm:$0xf] %vm976_vm2, %v1183_v25  ;;  %1015 = vst.msk [vmem:[%s1874_s3 + $0x98] sm:$0xf] %vm976_vm2, %v1215_v26  ;;  %v1184_v33 = vpack.c.bf16 %v663_v27, %v663_v27  ;;  %v1216_v34 = vpack.c.bf16 %v695_v28, %v695_v28 }
  0xf1   :  { %981 = vst.msk [vmem:[%s1874_s3 + $0x10] sm:$0xf] %vm976_vm2, %v1181_v29  ;;  %1013 = vst.msk [vmem:[%s1874_s3 + $0x90] sm:$0xf] %vm976_vm2, %v1213_v30  ;;  %v1182_v35 = vpack.c.bf16 %v661_v31, %v661_v31  ;;  %v1214_v37 = vpack.c.bf16 %v693_v32, %v693_v32  ;;  %v1292_v38 = vpop.f32.mrb[8].mxu0  ;;  %v1324_v39 = vpop.f32.mrb[8].mxu1 }
  0xf2   :  { %984 = vst.msk [vmem:[%s1874_s3 + $0x1c] sm:$0xf] %vm976_vm2, %v1184_v33  ;;  %1016 = vst.msk [vmem:[%s1874_s3 + $0x9c] sm:$0xf] %vm976_vm2, %v1216_v34  ;;  %v442_v40 = vadd.f32 %v1292_v38, %v1549_v36  ;;  %v570_v41 = vadd.f32 %v1324_v39, %v1549_v36  ;;  %v433_v42 = vpop.f32.mrb[9].mxu0  ;;  %v561_v43 = vpop.f32.mrb[9].mxu1 }
  0xf3   :  { %982 = vst.msk [vmem:[%s1874_s3 + $0x14] sm:$0xf] %vm976_vm2, %v1182_v35  ;;  %1014 = vst.msk [vmem:[%s1874_s3 + $0x94] sm:$0xf] %vm976_vm2, %v1214_v37  ;;  %v434_v44 = vadd.f32 %v1549_v36, %v433_v42  ;;  %v562_v45 = vadd.f32 %v1549_v36, %v561_v43  ;;  %v1293_v46 = vpop.f32.mrb[10].mxu0  ;;  %v1325_v47 = vpop.f32.mrb[10].mxu1 }
  0xf4   :  { %v666_v48 = vmax.f32 %v442_v40, 0.0  ;;  %v698_v49 = vmax.f32 %v570_v41, 0.0  ;;  %v445_v50 = vadd.f32 %v1293_v46, %v1549_v36  ;;  %v573_v51 = vadd.f32 %v1325_v47, %v1549_v36  ;;  %v436_v52 = vpop.f32.mrb[11].mxu0  ;;  %v564_v53 = vpop.f32.mrb[11].mxu1 }
  0xf5   :  { %v664_v54 = vmax.f32 %v434_v44, 0.0  ;;  %v696_v55 = vmax.f32 %v562_v45, 0.0  ;;  %v437_v56 = vadd.f32 %v1549_v36, %v436_v52  ;;  %v565_v57 = vadd.f32 %v1549_v36, %v564_v53 }
  0xf6   :  { %v1187_v58 = vpack.c.bf16 %v666_v48, %v666_v48  ;;  %v1219_v59 = vpack.c.bf16 %v698_v49, %v698_v49  ;;  %v667_v60 = vmax.f32 %v445_v50, 0.0  ;;  %v699_v61 = vmax.f32 %v573_v51, 0.0 }
  0xf7   :  { %v1185_v62 = vpack.c.bf16 %v664_v54, %v664_v54  ;;  %v1217_v63 = vpack.c.bf16 %v696_v55, %v696_v55  ;;  %v665_v0 = vmax.f32 %v437_v56, 0.0  ;;  %v697_v1 = vmax.f32 %v565_v57, 0.0 }
  0xf8   :  { %987 = vst.msk [vmem:[%s1874_s3 + $0x28] sm:$0xf] %vm976_vm2, %v1187_v58  ;;  %1019 = vst.msk [vmem:[%s1874_s3 + $0xa8] sm:$0xf] %vm976_vm2, %v1219_v59  ;;  %v1188_v2 = vpack.c.bf16 %v667_v60, %v667_v60  ;;  %v1220_v3 = vpack.c.bf16 %v699_v61, %v699_v61 }
  0xf9   :  { %985 = vst.msk [vmem:[%s1874_s3 + $0x20] sm:$0xf] %vm976_vm2, %v1185_v62  ;;  %1017 = vst.msk [vmem:[%s1874_s3 + $0xa0] sm:$0xf] %vm976_vm2, %v1217_v63  ;;  %v1186_v4 = vpack.c.bf16 %v665_v0, %v665_v0  ;;  %v1218_v5 = vpack.c.bf16 %v697_v1, %v697_v1  ;;  %v1296_v6 = vpop.f32.mrb[12].mxu0  ;;  %v1328_v7 = vpop.f32.mrb[12].mxu1 }
  0xfa   :  { %988 = vst.msk [vmem:[%s1874_s3 + $0x2c] sm:$0xf] %vm976_vm2, %v1188_v2  ;;  %1020 = vst.msk [vmem:[%s1874_s3 + $0xac] sm:$0xf] %vm976_vm2, %v1220_v3  ;;  %v458_v8 = vadd.f32 %v1296_v6, %v1549_v36  ;;  %v586_v9 = vadd.f32 %v1328_v7, %v1549_v36  ;;  %v449_v10 = vpop.f32.mrb[13].mxu0  ;;  %v577_v11 = vpop.f32.mrb[13].mxu1 }
  0xfb   :  { %986 = vst.msk [vmem:[%s1874_s3 + $0x24] sm:$0xf] %vm976_vm2, %v1186_v4  ;;  %1018 = vst.msk [vmem:[%s1874_s3 + $0xa4] sm:$0xf] %vm976_vm2, %v1218_v5  ;;  %v450_v12 = vadd.f32 %v1549_v36, %v449_v10  ;;  %v578_v13 = vadd.f32 %v1549_v36, %v577_v11  ;;  %v1297_v14 = vpop.f32.mrb[14].mxu0  ;;  %v1329_v15 = vpop.f32.mrb[14].mxu1 }
  0xfc   :  { %v670_v16 = vmax.f32 %v458_v8, 0.0  ;;  %v702_v17 = vmax.f32 %v586_v9, 0.0  ;;  %v461_v18 = vadd.f32 %v1297_v14, %v1549_v36  ;;  %v589_v19 = vadd.f32 %v1329_v15, %v1549_v36  ;;  %v452_v20 = vpop.f32.mrb[15].mxu0  ;;  %v580_v21 = vpop.f32.mrb[15].mxu1 }
  0xfd   :  { %v668_v22 = vmax.f32 %v450_v12, 0.0  ;;  %v700_v23 = vmax.f32 %v578_v13, 0.0  ;;  %v453_v24 = vadd.f32 %v1549_v36, %v452_v20  ;;  %v581_v25 = vadd.f32 %v1549_v36, %v580_v21 }
  0xfe   :  { %v1191_v26 = vpack.c.bf16 %v670_v16, %v670_v16  ;;  %v1223_v27 = vpack.c.bf16 %v702_v17, %v702_v17  ;;  %v671_v28 = vmax.f32 %v461_v18, 0.0  ;;  %v703_v29 = vmax.f32 %v589_v19, 0.0 }
  0xff   :  { %v1189_v30 = vpack.c.bf16 %v668_v22, %v668_v22  ;;  %v1221_v31 = vpack.c.bf16 %v700_v23, %v700_v23  ;;  %v669_v32 = vmax.f32 %v453_v24, 0.0  ;;  %v701_v33 = vmax.f32 %v581_v25, 0.0 }
 0x100   :  { %991 = vst.msk [vmem:[%s1874_s3 + $0x38] sm:$0xf] %vm976_vm2, %v1191_v26  ;;  %1023 = vst.msk [vmem:[%s1874_s3 + $0xb8] sm:$0xf] %vm976_vm2, %v1223_v27  ;;  %v1192_v34 = vpack.c.bf16 %v671_v28, %v671_v28  ;;  %v1224_v35 = vpack.c.bf16 %v703_v29, %v703_v29 }
 0x101   :  { %989 = vst.msk [vmem:[%s1874_s3 + $0x30] sm:$0xf] %vm976_vm2, %v1189_v30  ;;  %1021 = vst.msk [vmem:[%s1874_s3 + $0xb0] sm:$0xf] %vm976_vm2, %v1221_v31  ;;  %v1190_v37 = vpack.c.bf16 %v669_v32, %v669_v32  ;;  %v1222_v38 = vpack.c.bf16 %v701_v33, %v701_v33  ;;  %v1300_v39 = vpop.f32.mrb[16].mxu0  ;;  %v1332_v40 = vpop.f32.mrb[16].mxu1 }
 0x102   :  { %992 = vst.msk [vmem:[%s1874_s3 + $0x3c] sm:$0xf] %vm976_vm2, %v1192_v34  ;;  %1024 = vst.msk [vmem:[%s1874_s3 + $0xbc] sm:$0xf] %vm976_vm2, %v1224_v35  ;;  %v474_v41 = vadd.f32 %v1300_v39, %v1549_v36  ;;  %v602_v42 = vadd.f32 %v1332_v40, %v1549_v36  ;;  %v465_v43 = vpop.f32.mrb[17].mxu0  ;;  %v593_v44 = vpop.f32.mrb[17].mxu1 }
 0x103   :  { %990 = vst.msk [vmem:[%s1874_s3 + $0x34] sm:$0xf] %vm976_vm2, %v1190_v37  ;;  %1022 = vst.msk [vmem:[%s1874_s3 + $0xb4] sm:$0xf] %vm976_vm2, %v1222_v38  ;;  %v466_v45 = vadd.f32 %v1549_v36, %v465_v43  ;;  %v594_v46 = vadd.f32 %v1549_v36, %v593_v44  ;;  %v1301_v47 = vpop.f32.mrb[18].mxu0  ;;  %v1333_v48 = vpop.f32.mrb[18].mxu1 }
 0x104   :  { %v674_v49 = vmax.f32 %v474_v41, 0.0  ;;  %v706_v50 = vmax.f32 %v602_v42, 0.0  ;;  %v477_v51 = vadd.f32 %v1301_v47, %v1549_v36  ;;  %v605_v52 = vadd.f32 %v1333_v48, %v1549_v36  ;;  %v468_v53 = vpop.f32.mrb[19].mxu0  ;;  %v596_v54 = vpop.f32.mrb[19].mxu1 }
 0x105   :  { %v672_v55 = vmax.f32 %v466_v45, 0.0  ;;  %v704_v56 = vmax.f32 %v594_v46, 0.0  ;;  %v469_v57 = vadd.f32 %v1549_v36, %v468_v53  ;;  %v597_v58 = vadd.f32 %v1549_v36, %v596_v54 }
 0x106   :  { %v1195_v59 = vpack.c.bf16 %v674_v49, %v674_v49  ;;  %v1227_v60 = vpack.c.bf16 %v706_v50, %v706_v50  ;;  %v675_v61 = vmax.f32 %v477_v51, 0.0  ;;  %v707_v62 = vmax.f32 %v605_v52, 0.0 }
 0x107   :  { %v1193_v63 = vpack.c.bf16 %v672_v55, %v672_v55  ;;  %v1225_v0 = vpack.c.bf16 %v704_v56, %v704_v56  ;;  %v673_v1 = vmax.f32 %v469_v57, 0.0  ;;  %v705_v2 = vmax.f32 %v597_v58, 0.0 }
 0x108   :  { %995 = vst.msk [vmem:[%s1874_s3 + $0x48] sm:$0xf] %vm976_vm2, %v1195_v59  ;;  %1027 = vst.msk [vmem:[%s1874_s3 + $0xc8] sm:$0xf] %vm976_vm2, %v1227_v60  ;;  %v1196_v3 = vpack.c.bf16 %v675_v61, %v675_v61  ;;  %v1228_v4 = vpack.c.bf16 %v707_v62, %v707_v62 }
 0x109   :  { %993 = vst.msk [vmem:[%s1874_s3 + $0x40] sm:$0xf] %vm976_vm2, %v1193_v63  ;;  %1025 = vst.msk [vmem:[%s1874_s3 + $0xc0] sm:$0xf] %vm976_vm2, %v1225_v0  ;;  %v1194_v5 = vpack.c.bf16 %v673_v1, %v673_v1  ;;  %v1226_v6 = vpack.c.bf16 %v705_v2, %v705_v2  ;;  %v1304_v7 = vpop.f32.mrb[20].mxu0  ;;  %v1336_v8 = vpop.f32.mrb[20].mxu1 }
 0x10a   :  { %996 = vst.msk [vmem:[%s1874_s3 + $0x4c] sm:$0xf] %vm976_vm2, %v1196_v3  ;;  %1028 = vst.msk [vmem:[%s1874_s3 + $0xcc] sm:$0xf] %vm976_vm2, %v1228_v4  ;;  %v490_v9 = vadd.f32 %v1304_v7, %v1549_v36  ;;  %v618_v10 = vadd.f32 %v1336_v8, %v1549_v36  ;;  %v481_v11 = vpop.f32.mrb[21].mxu0  ;;  %v609_v12 = vpop.f32.mrb[21].mxu1 }
 0x10b   :  { %994 = vst.msk [vmem:[%s1874_s3 + $0x44] sm:$0xf] %vm976_vm2, %v1194_v5  ;;  %1026 = vst.msk [vmem:[%s1874_s3 + $0xc4] sm:$0xf] %vm976_vm2, %v1226_v6  ;;  %v482_v13 = vadd.f32 %v1549_v36, %v481_v11  ;;  %v610_v14 = vadd.f32 %v1549_v36, %v609_v12  ;;  %v1305_v15 = vpop.f32.mrb[22].mxu0  ;;  %v1337_v16 = vpop.f32.mrb[22].mxu1 }
 0x10c   :  { %v678_v17 = vmax.f32 %v490_v9, 0.0  ;;  %v710_v18 = vmax.f32 %v618_v10, 0.0  ;;  %v493_v19 = vadd.f32 %v1305_v15, %v1549_v36  ;;  %v621_v20 = vadd.f32 %v1337_v16, %v1549_v36  ;;  %v484_v21 = vpop.f32.mrb[23].mxu0  ;;  %v612_v22 = vpop.f32.mrb[23].mxu1 }
 0x10d   :  { %v676_v23 = vmax.f32 %v482_v13, 0.0  ;;  %v708_v24 = vmax.f32 %v610_v14, 0.0  ;;  %v485_v25 = vadd.f32 %v1549_v36, %v484_v21  ;;  %v613_v26 = vadd.f32 %v1549_v36, %v612_v22 }
 0x10e   :  { %v1199_v27 = vpack.c.bf16 %v678_v17, %v678_v17  ;;  %v1231_v28 = vpack.c.bf16 %v710_v18, %v710_v18  ;;  %v679_v29 = vmax.f32 %v493_v19, 0.0  ;;  %v711_v30 = vmax.f32 %v621_v20, 0.0 }
 0x10f   :  { %v1197_v31 = vpack.c.bf16 %v676_v23, %v676_v23  ;;  %v1229_v32 = vpack.c.bf16 %v708_v24, %v708_v24  ;;  %v677_v33 = vmax.f32 %v485_v25, 0.0  ;;  %v709_v34 = vmax.f32 %v613_v26, 0.0 }
 0x110   :  { %999 = vst.msk [vmem:[%s1874_s3 + $0x58] sm:$0xf] %vm976_vm2, %v1199_v27  ;;  %1031 = vst.msk [vmem:[%s1874_s3 + $0xd8] sm:$0xf] %vm976_vm2, %v1231_v28  ;;  %v1200_v35 = vpack.c.bf16 %v679_v29, %v679_v29  ;;  %v1232_v37 = vpack.c.bf16 %v711_v30, %v711_v30 }
 0x111   :  { %997 = vst.msk [vmem:[%s1874_s3 + $0x50] sm:$0xf] %vm976_vm2, %v1197_v31  ;;  %1029 = vst.msk [vmem:[%s1874_s3 + $0xd0] sm:$0xf] %vm976_vm2, %v1229_v32  ;;  %v1198_v38 = vpack.c.bf16 %v677_v33, %v677_v33  ;;  %v1230_v39 = vpack.c.bf16 %v709_v34, %v709_v34  ;;  %v1308_v40 = vpop.f32.mrb[24].mxu0  ;;  %v1340_v41 = vpop.f32.mrb[24].mxu1 }
 0x112   :  { %1000 = vst.msk [vmem:[%s1874_s3 + $0x5c] sm:$0xf] %vm976_vm2, %v1200_v35  ;;  %1032 = vst.msk [vmem:[%s1874_s3 + $0xdc] sm:$0xf] %vm976_vm2, %v1232_v37  ;;  %v506_v42 = vadd.f32 %v1308_v40, %v1549_v36  ;;  %v634_v43 = vadd.f32 %v1340_v41, %v1549_v36  ;;  %v497_v44 = vpop.f32.mrb[25].mxu0  ;;  %v625_v45 = vpop.f32.mrb[25].mxu1 }
 0x113   :  { %998 = vst.msk [vmem:[%s1874_s3 + $0x54] sm:$0xf] %vm976_vm2, %v1198_v38  ;;  %1030 = vst.msk [vmem:[%s1874_s3 + $0xd4] sm:$0xf] %vm976_vm2, %v1230_v39  ;;  %v498_v46 = vadd.f32 %v1549_v36, %v497_v44  ;;  %v626_v47 = vadd.f32 %v1549_v36, %v625_v45  ;;  %v1309_v48 = vpop.f32.mrb[26].mxu0  ;;  %v1341_v49 = vpop.f32.mrb[26].mxu1 }
 0x114   :  { %v682_v50 = vmax.f32 %v506_v42, 0.0  ;;  %v714_v51 = vmax.f32 %v634_v43, 0.0  ;;  %v509_v52 = vadd.f32 %v1309_v48, %v1549_v36  ;;  %v637_v53 = vadd.f32 %v1341_v49, %v1549_v36  ;;  %v500_v54 = vpop.f32.mrb[27].mxu0  ;;  %v628_v55 = vpop.f32.mrb[27].mxu1 }
 0x115   :  { %v680_v56 = vmax.f32 %v498_v46, 0.0  ;;  %v712_v57 = vmax.f32 %v626_v47, 0.0  ;;  %v501_v58 = vadd.f32 %v1549_v36, %v500_v54  ;;  %v629_v59 = vadd.f32 %v1549_v36, %v628_v55 }
 0x116   :  { %v1203_v60 = vpack.c.bf16 %v682_v50, %v682_v50  ;;  %v1235_v61 = vpack.c.bf16 %v714_v51, %v714_v51  ;;  %v683_v62 = vmax.f32 %v509_v52, 0.0  ;;  %v715_v63 = vmax.f32 %v637_v53, 0.0 }
 0x117   :  { %v1201_v0 = vpack.c.bf16 %v680_v56, %v680_v56  ;;  %v1233_v1 = vpack.c.bf16 %v712_v57, %v712_v57  ;;  %v681_v2 = vmax.f32 %v501_v58, 0.0  ;;  %v713_v3 = vmax.f32 %v629_v59, 0.0 }
 0x118   :  { %1003 = vst.msk [vmem:[%s1874_s3 + $0x68] sm:$0xf] %vm976_vm2, %v1203_v60  ;;  %1035 = vst.msk [vmem:[%s1874_s3 + $0xe8] sm:$0xf] %vm976_vm2, %v1235_v61  ;;  %v1204_v4 = vpack.c.bf16 %v683_v62, %v683_v62  ;;  %v1236_v5 = vpack.c.bf16 %v715_v63, %v715_v63 }
 0x119   :  { %1001 = vst.msk [vmem:[%s1874_s3 + $0x60] sm:$0xf] %vm976_vm2, %v1201_v0  ;;  %1033 = vst.msk [vmem:[%s1874_s3 + $0xe0] sm:$0xf] %vm976_vm2, %v1233_v1  ;;  %v1202_v6 = vpack.c.bf16 %v681_v2, %v681_v2  ;;  %v1234_v7 = vpack.c.bf16 %v713_v3, %v713_v3  ;;  %v1312_v8 = vpop.f32.mrb[28].mxu0  ;;  %v1344_v9 = vpop.f32.mrb[28].mxu1 }
 0x11a   :  { %1004 = vst.msk [vmem:[%s1874_s3 + $0x6c] sm:$0xf] %vm976_vm2, %v1204_v4  ;;  %1036 = vst.msk [vmem:[%s1874_s3 + $0xec] sm:$0xf] %vm976_vm2, %v1236_v5  ;;  %v522_v10 = vadd.f32 %v1312_v8, %v1549_v36  ;;  %v650_v11 = vadd.f32 %v1344_v9, %v1549_v36  ;;  %v513_v12 = vpop.f32.mrb[29].mxu0  ;;  %v641_v13 = vpop.f32.mrb[29].mxu1 }
 0x11b   :  { %1002 = vst.msk [vmem:[%s1874_s3 + $0x64] sm:$0xf] %vm976_vm2, %v1202_v6  ;;  %1034 = vst.msk [vmem:[%s1874_s3 + $0xe4] sm:$0xf] %vm976_vm2, %v1234_v7  ;;  %v514_v14 = vadd.f32 %v1549_v36, %v513_v12  ;;  %v642_v15 = vadd.f32 %v1549_v36, %v641_v13  ;;  %v1313_v16 = vpop.f32.mrb[30].mxu0  ;;  %v1345_v17 = vpop.f32.mrb[30].mxu1 }
 0x11c   :  { %v686_v18 = vmax.f32 %v522_v10, 0.0  ;;  %v718_v19 = vmax.f32 %v650_v11, 0.0  ;;  %v525_v20 = vadd.f32 %v1313_v16, %v1549_v36  ;;  %v653_v21 = vadd.f32 %v1345_v17, %v1549_v36  ;;  %v516_v22 = vpop.f32.mrb[31].mxu0  ;;  %v644_v23 = vpop.f32.mrb[31].mxu1 }
 0x11d   :  { %v684_v24 = vmax.f32 %v514_v14, 0.0  ;;  %v716_v25 = vmax.f32 %v642_v15, 0.0  ;;  %v517_v26 = vadd.f32 %v1549_v36, %v516_v22  ;;  %v645_v27 = vadd.f32 %v1549_v36, %v644_v23 }
 0x11e   :  { %v1207_v28 = vpack.c.bf16 %v686_v18, %v686_v18  ;;  %v1239_v29 = vpack.c.bf16 %v718_v19, %v718_v19  ;;  %v687_v30 = vmax.f32 %v525_v20, 0.0  ;;  %v719_v31 = vmax.f32 %v653_v21, 0.0 }
 0x11f   :  { %v1205_v32 = vpack.c.bf16 %v684_v24, %v684_v24  ;;  %v1237_v33 = vpack.c.bf16 %v716_v25, %v716_v25  ;;  %v685_v34 = vmax.f32 %v517_v26, 0.0  ;;  %v717_v35 = vmax.f32 %v645_v27, 0.0 }
 0x120   :  { %1007 = vst.msk [vmem:[%s1874_s3 + $0x78] sm:$0xf] %vm976_vm2, %v1207_v28  ;;  %1039 = vst.msk [vmem:[%s1874_s3 + $0xf8] sm:$0xf] %vm976_vm2, %v1239_v29  ;;  %v1208_v37 = vpack.c.bf16 %v687_v30, %v687_v30  ;;  %v1240_v36 = vpack.c.bf16 %v719_v31, %v719_v31 }
 0x121   :  { %1005 = vst.msk [vmem:[%s1874_s3 + $0x70] sm:$0xf] %vm976_vm2, %v1205_v32  ;;  %1037 = vst.msk [vmem:[%s1874_s3 + $0xf0] sm:$0xf] %vm976_vm2, %v1237_v33  ;;  %v1206_v38 = vpack.c.bf16 %v685_v34, %v685_v34  ;;  %v1238_v39 = vpack.c.bf16 %v717_v35, %v717_v35 }
 0x122   :  { %1008 = vst.msk [vmem:[%s1874_s3 + $0x7c] sm:$0xf] %vm976_vm2, %v1208_v37  ;;  %1040 = vst.msk [vmem:[%s1874_s3 + $0xfc] sm:$0xf] %vm976_vm2, %v1240_v36 }
 0x123   :  { %1006 = vst.msk [vmem:[%s1874_s3 + $0x74] sm:$0xf] %vm976_vm2, %v1206_v38  ;;  %1038 = vst.msk [vmem:[%s1874_s3 + $0xf4] sm:$0xf] %vm976_vm2, %v1238_v39 }

// kernel: barlow_twins_forward.3
= control target key start
LH: loop header
LB: loop body
LE: loop exit
PB: predicated region body
PF: predicated region fallthrough
CT: control target
= control target key end

     0   :  { %v298_v28 = vlaneseq  ;;  %v2368_v36 = vmov 1966171168   ;;  %s2933_s0 = inlined_call_operand.vmem [shape: bf16[2,2048], index: 0, kind: input, shape index: {}]   ;;  %s2934_s1 = inlined_call_operand.vmem [shape: bf16[2048,128], index: 1, kind: input, shape index: {}]   ;;  %s2935_s2 = inlined_call_operand.vmem [shape: f32[1,128], index: 2, kind: input, shape index: {}]   ;;  %s2936_s3 = inlined_call_operand.vmem [shape: f32[1,128], index: 3, kind: input, shape index: {}]   ;;  %s2937_s4 = inlined_call_operand.vmem [shape: bf16[128,128], index: 4, kind: input, shape index: {}]   ;;  %s2938_s5 = inlined_call_operand.vmem [shape: f32[1,128], index: 5, kind: input, shape index: {}]   ;;  %s2939_s6 = inlined_call_operand.vmem [shape: f32[1,128], index: 6, kind: input, shape index: {}]   ;;  %s2940_s7 = inlined_call_operand.vmem [shape: bf16[128,64], index: 7, kind: input, shape index: {}]   ;;  %s2941_s8 = inlined_call_operand.vmem [shape: f32[1,64], index: 8, kind: input, shape index: {}]   ;;  %s2942_s9 = inlined_call_operand.hbm [shape: f32[2,64], index: 9, kind: output, shape index: {}]  }
   0x1   :  { %v2194_v0 = vld [vmem:[%s2934_s1 + $0x40] sm:$0xff]   ;;  %v2198_v4 = vld [vmem:[%s2934_s1 + $0x48] sm:$0xff]   ;;  %v2202_v8 = vld [vmem:[%s2934_s1 + $0x50] sm:$0xff]   ;;  %v296_v37 = vunpack.c.l.s4 %v2368_v36 }
   0x2   :  { %v2195_v1 = vld [vmem:[%s2934_s1 + $0xc0] sm:$0xff]   ;;  %1956 = vmatprep.subr.bf16.mxu0 %v2194_v0  ;;  %v2199_v5 = vld [vmem:[%s2934_s1 + $0xc8] sm:$0xff]   ;;  %v2203_v9 = vld [vmem:[%s2934_s1 + $0xd0] sm:$0xff]   ;;  %v299_v33 = vshrl.u32 %v298_v28, 7 }
   0x3   :  { %v2196_v2 = vld [vmem:[%s2934_s1] sm:$0xff]   ;;  %1978 = vmatprep.subr.bf16.mxu1 %v2195_v1  ;;  %v2200_v6 = vld [vmem:[%s2934_s1 + $0x8] sm:$0xff]   ;;  %v2204_v10 = vld [vmem:[%s2934_s1 + $0x10] sm:$0xff]   ;;  %v297_v40 = vunpack.c.0.s8 %v296_v37 }
   0x4   :  { %v2197_v3 = vld [vmem:[%s2934_s1 + $0x80] sm:$0xff]   ;;  %1957 = vmatpush3.bf16.msra.mxu0 %v2196_v2  ;;  %v2201_v7 = vld [vmem:[%s2934_s1 + $0x88] sm:$0xff]   ;;  %v2205_v11 = vld [vmem:[%s2934_s1 + $0x90] sm:$0xff]  }
   0x5   :  { %1979 = vmatpush3.bf16.msra.mxu1 %v2197_v3  ;;  %1958 = vmatprep.subr.bf16.mxu0 %v2198_v4  ;;  %v2206_v12 = vld [vmem:[%s2934_s1 + $0x58] sm:$0xff]   ;;  %v2210_v16 = vld [vmem:[%s2934_s1 + $0x60] sm:$0xff]   ;;  %v2214_v20 = vld [vmem:[%s2934_s1 + $0x68] sm:$0xff]   ;;  %v2527_v41 = vsub.s32 %v297_v40, %v299_v33 }
   0x6   :  { %1980 = vmatprep.subr.bf16.mxu1 %v2199_v5  ;;  %v2207_v13 = vld [vmem:[%s2934_s1 + $0xd8] sm:$0xff]   ;;  %v2211_v17 = vld [vmem:[%s2934_s1 + $0xe0] sm:$0xff]   ;;  %v2215_v21 = vld [vmem:[%s2934_s1 + $0xe8] sm:$0xff]  }
   0x7   :  { %v2208_v14 = vld [vmem:[%s2934_s1 + $0x18] sm:$0xff]   ;;  %v2212_v18 = vld [vmem:[%s2934_s1 + $0x20] sm:$0xff]   ;;  %v2216_v22 = vld [vmem:[%s2934_s1 + $0x28] sm:$0xff]  }
   0x8   :  { %1959 = vmatpush3.bf16.msra.mxu0 %v2200_v6  ;;  %v2209_v15 = vld [vmem:[%s2934_s1 + $0x98] sm:$0xff]   ;;  %v2213_v19 = vld [vmem:[%s2934_s1 + $0xa0] sm:$0xff]   ;;  %v2217_v23 = vld [vmem:[%s2934_s1 + $0xa8] sm:$0xff]  }
   0x9   :  { %1981 = vmatpush3.bf16.msra.mxu1 %v2201_v7  ;;  %1960 = vmatprep.subr.bf16.mxu0 %v2202_v8  ;;  %v2218_v24 = vld [vmem:[%s2934_s1 + $0x70] sm:$0xff]   ;;  %v2222_v29 = vld [vmem:[%s2934_s1 + $0x78] sm:$0xff]   ;;  %v34_v34 = vld [vmem:[%s2933_s0] sm:$0xff] }
   0xa   :  { %1982 = vmatprep.subr.bf16.mxu1 %v2203_v9  ;;  %v2219_v25 = vld [vmem:[%s2934_s1 + $0xf0] sm:$0xff]   ;;  %v2223_v30 = vld [vmem:[%s2934_s1 + $0xf8] sm:$0xff]   ;;  %v2227_v35 = vld [vmem:[%s2934_s1 + $0x140] sm:$0xff]   ;;  %v294_v39 = vcombine.high %v34_v34, %v34_v34  ;;  %v301_v42 = vrot.slane %v34_v34, %v2527_v41 }
   0xb   :  { %v2220_v26 = vld [vmem:[%s2934_s1 + $0x30] sm:$0xff]   ;;  %v2224_v31 = vld [vmem:[%s2934_s1 + $0x38] sm:$0xff]   ;;  %v2228_v38 = vld [vmem:[%s2934_s1 + $0x1c0] sm:$0xff]  }
   0xc   :  { %1961 = vmatpush3.bf16.msra.mxu0 %v2204_v10  ;;  %v2221_v27 = vld [vmem:[%s2934_s1 + $0xb0] sm:$0xff]   ;;  %v2225_v32 = vld [vmem:[%s2934_s1 + $0xb8] sm:$0xff]   ;;  %v2531_v43 = vrot.slane %v294_v39, %v2527_v41  ;;  %v309_v44 = vcombine.high %v301_v42, %v301_v42  ;;  %v317_v45 = vrot.slane %v301_v42, %v2527_v41  ;;  %v2229_v47 = vld [vmem:[%s2934_s1 + $0x100] sm:$0xff]  }
   0xd   :  { %1983 = vmatpush3.bf16.msra.mxu1 %v2205_v11  ;;  %1962 = vmatprep.subr.bf16.mxu0 %v2206_v12  ;;  %v2230_v49 = vld [vmem:[%s2934_s1 + $0x180] sm:$0xff]   ;;  %v2231_v52 = vld [vmem:[%s2934_s1 + $0x148] sm:$0xff]   ;;  %v2235_v58 = vld [vmem:[%s2934_s1 + $0x150] sm:$0xff]  }
   0xe   :  { %1984 = vmatprep.subr.bf16.mxu1 %v2207_v13  ;;  %v310_v46 = vcombine.high %v2531_v43, %v2531_v43  ;;  %v331_v48 = vrot.slane %v309_v44, %v2527_v41  ;;  %v339_v51 = vcombine.high %v317_v45, %v317_v45  ;;  %v2232_v54 = vld [vmem:[%s2934_s1 + $0x1c8] sm:$0xff]   ;;  %v2236_v59 = vld [vmem:[%s2934_s1 + $0x1d0] sm:$0xff]   ;;  %v2239_v62 = vld [vmem:[%s2934_s1 + $0x158] sm:$0xff]  }
   0xf   :  { %v2233_v55 = vld [vmem:[%s2934_s1 + $0x108] sm:$0xff]   ;;  %v2237_v60 = vld [vmem:[%s2934_s1 + $0x110] sm:$0xff]   ;;  %v2240_v63 = vld [vmem:[%s2934_s1 + $0x1d8] sm:$0xff]  }
  0x10   :  { %1963 = vmatpush3.bf16.msra.mxu0 %v2208_v14  ;;  %v338_v50 = vrot.slane %v310_v46, %v2527_v41  ;;  %1208 = vmatprep.mubr.bf16.mxu0 %v331_v48  ;;  %v341_v53 = vcombine.high %v331_v48, %v331_v48  ;;  %v2234_v57 = vld [vmem:[%s2934_s1 + $0x188] sm:$0xff]   ;;  %v2238_v61 = vld [vmem:[%s2934_s1 + $0x190] sm:$0xff]   ;;  %v2241_v0 = vld [vmem:[%s2934_s1 + $0x118] sm:$0xff]  }
  0x11   :  { %1985 = vmatpush3.bf16.msra.mxu1 %v2209_v15  ;;  %1964 = vmatprep.subr.bf16.mxu0 %v2210_v16  ;;  %v2242_v1 = vld [vmem:[%s2934_s1 + $0x198] sm:$0xff]   ;;  %v2243_v2 = vld [vmem:[%s2934_s1 + $0x160] sm:$0xff]   ;;  %v2247_v6 = vld [vmem:[%s2934_s1 + $0x168] sm:$0xff]  }
  0x12   :  { %1986 = vmatprep.subr.bf16.mxu1 %v2211_v17  ;;  %v342_v56 = vcombine.high %v338_v50, %v338_v50  ;;  %1248 = vmatprep.mubr.bf16.mxu1 %v341_v53  ;;  %v2244_v3 = vld [vmem:[%s2934_s1 + $0x1e0] sm:$0xff]   ;;  %v2248_v7 = vld [vmem:[%s2934_s1 + $0x1e8] sm:$0xff]   ;;  %v2251_v10 = vld [vmem:[%s2934_s1 + $0x170] sm:$0xff]  }
  0x13   :  { %v2245_v4 = vld [vmem:[%s2934_s1 + $0x120] sm:$0xff]   ;;  %v2249_v8 = vld [vmem:[%s2934_s1 + $0x128] sm:$0xff]   ;;  %v2252_v11 = vld [vmem:[%s2934_s1 + $0x1f0] sm:$0xff]  }
  0x14   :  { %1965 = vmatpush3.bf16.msra.mxu0 %v2212_v18  ;;  %v2246_v5 = vld [vmem:[%s2934_s1 + $0x1a0] sm:$0xff]   ;;  %v2250_v9 = vld [vmem:[%s2934_s1 + $0x1a8] sm:$0xff]   ;;  %v2253_v12 = vld [vmem:[%s2934_s1 + $0x130] sm:$0xff]   ;;  %v324_v18 = vrot.slane %v2531_v43, %v2527_v41 }
  0x15   :  { %1987 = vmatpush3.bf16.msra.mxu1 %v2213_v19  ;;  %1966 = vmatprep.subr.bf16.mxu0 %v2214_v20  ;;  %v2254_v13 = vld [vmem:[%s2934_s1 + $0x1b0] sm:$0xff]   ;;  %v2255_v14 = vld [vmem:[%s2934_s1 + $0x178] sm:$0xff]   ;;  %v2259_v19 = vld [vmem:[%s2934_s1 + $0x240] sm:$0xff]  }
  0x16   :  { %1988 = vmatprep.subr.bf16.mxu1 %v2215_v21  ;;  %v2256_v15 = vld [vmem:[%s2934_s1 + $0x1f8] sm:$0xff]   ;;  %v2260_v20 = vld [vmem:[%s2934_s1 + $0x2c0] sm:$0xff]   ;;  %v2267_v28 = vld [vmem:[%s2934_s1 + $0x250] sm:$0xff]  }
  0x17   :  { %v2257_v16 = vld [vmem:[%s2934_s1 + $0x138] sm:$0xff]   ;;  %v2261_v21 = vld [vmem:[%s2934_s1 + $0x200] sm:$0xff]   ;;  %v2279_v40 = vld [vmem:[%s2934_s1 + $0x268] sm:$0xff]  }
  0x18   :  { %1967 = vmatpush3.bf16.msra.mxu0 %v2216_v22  ;;  %v2258_v17 = vld [vmem:[%s2934_s1 + $0x1b8] sm:$0xff]   ;;  %v2262_v22 = vld [vmem:[%s2934_s1 + $0x280] sm:$0xff]   ;;  %v2280_v42 = vld [vmem:[%s2934_s1 + $0x2e8] sm:$0xff]  }
  0x19   :  { %1989 = vmatpush3.bf16.msra.mxu1 %v2217_v23  ;;  %1968 = vmatprep.subr.bf16.mxu0 %v2218_v24  ;;  %v340_v23 = vcombine.high %v324_v18, %v324_v18  ;;  %v2263_v24 = vld [vmem:[%s2934_s1 + $0x248] sm:$0xff]   ;;  %v2272_v33 = vld [vmem:[%s2934_s1 + $0x2d8] sm:$0xff]   ;;  %v2275_v36 = vld [vmem:[%s2934_s1 + $0x260] sm:$0xff]  }
  0x1a   :  { %1990 = vmatprep.subr.bf16.mxu1 %v2219_v25  ;;  %v2264_v25 = vld [vmem:[%s2934_s1 + $0x2c8] sm:$0xff]   ;;  %v2273_v34 = vld [vmem:[%s2934_s1 + $0x218] sm:$0xff]   ;;  %v2276_v37 = vld [vmem:[%s2934_s1 + $0x2e0] sm:$0xff]  }
  0x1b   :  { %v2278_v39 = vld [vmem:[%s2934_s1 + $0x2a0] sm:$0xff]   ;;  %v2281_v43 = vld [vmem:[%s2934_s1 + $0x228] sm:$0xff]  }
  0x1c   :  { %1969 = vmatpush3.bf16.msra.mxu0 %v2220_v26  ;;  %v2265_v26 = vld [vmem:[%s2934_s1 + $0x208] sm:$0xff]  }
  0x1d   :  { %1991 = vmatpush3.bf16.msra.mxu1 %v2221_v27  ;;  %1970 = vmatprep.subr.bf16.mxu0 %v2222_v29  ;;  %v2266_v27 = vld [vmem:[%s2934_s1 + $0x288] sm:$0xff]   ;;  %v2268_v29 = vld [vmem:[%s2934_s1 + $0x2d0] sm:$0xff]  }
  0x1e   :  { %1992 = vmatprep.subr.bf16.mxu1 %v2223_v30  ;;  %v2269_v30 = vld [vmem:[%s2934_s1 + $0x210] sm:$0xff]   ;;  %v2282_v44 = vld [vmem:[%s2934_s1 + $0x2a8] sm:$0xff]  }
  0x1f   :  { %v35_v46 = vld [vmem:[%s2933_s0 + $0x8] sm:$0xff] }
  0x20   :  { %1971 = vmatpush3.bf16.msra.mxu0 %v2224_v31  ;;  %v2270_v31 = vld [vmem:[%s2934_s1 + $0x290] sm:$0xff]   ;;  %v350_v48 = vrot.slane %v35_v46, %v2527_v41 }
  0x21   :  { %1993 = vmatpush3.bf16.msra.mxu1 %v2225_v32  ;;  %2000 = vmatprep.subr.bf16.mxu0 %v2227_v35  ;;  %v2271_v32 = vld [vmem:[%s2934_s1 + $0x258] sm:$0xff]  }
  0x22   :  { %2022 = vmatprep.subr.bf16.mxu1 %v2228_v38  ;;  %v2274_v35 = vld [vmem:[%s2934_s1 + $0x298] sm:$0xff]   ;;  %v2277_v38 = vld [vmem:[%s2934_s1 + $0x220] sm:$0xff]  }
  0x23   :  { %1209 = vmatmul.mubr.bf16.vlgmr.msra.gmra.mrb[0].mxu0 %v317_v45  ;;  %v2283_v45 = vld [vmem:[%s2934_s1 + $0x270] sm:$0xff]  }
  0x24   :  { %2001 = vmatpush3.bf16.msra.mxu0 %v2229_v47  ;;  %1249 = vmatmul.mubr.bf16.vlgmr.msra.gmra.mrb[0].mxu1 %v339_v51  ;;  %v2284_v47 = vld [vmem:[%s2934_s1 + $0x2f0] sm:$0xff]  }
  0x25   :  { %2002 = vmatprep.subr.bf16.mxu0 %v2231_v52  ;;  %2023 = vmatpush3.bf16.msra.mxu1 %v2230_v49  ;;  %v343_v49 = vcombine.high %v35_v46, %v35_v46  ;;  %v2286_v51 = vld [vmem:[%s2934_s1 + $0x2b0] sm:$0xff]   ;;  %v358_v52 = vcombine.high %v350_v48, %v350_v48 }
  0x26   :  { %1288 = vmatprep.mubr.bf16.mxu0 %v338_v50  ;;  %2024 = vmatprep.subr.bf16.mxu1 %v2232_v54  ;;  %v2285_v50 = vld [vmem:[%s2934_s1 + $0x230] sm:$0xff]   ;;  %v2287_v54 = vld [vmem:[%s2934_s1 + $0x278] sm:$0xff]  }
  0x27   :  { %1328 = vmatprep.mubr.bf16.mxu1 %v342_v56  ;;  %v2719_v53 = vrot.slane %v343_v49, %v2527_v41  ;;  %v380_v56 = vrot.slane %v358_v52, %v2527_v41 }
  0x28   :  { %2003 = vmatpush3.bf16.msra.mxu0 %v2233_v55  ;;  %v2288_v55 = vld [vmem:[%s2934_s1 + $0x2f8] sm:$0xff]  }
  0x29   :  { %2004 = vmatprep.subr.bf16.mxu0 %v2235_v58  ;;  %2025 = vmatpush3.bf16.msra.mxu1 %v2234_v57  ;;  %v359_v57 = vcombine.high %v2719_v53, %v2719_v53  ;;  %v2289_v58 = vld [vmem:[%s2934_s1 + $0x238] sm:$0xff]  }
  0x2a   :  { %2026 = vmatprep.subr.bf16.mxu1 %v2236_v59  ;;  %v2290_v59 = vld [vmem:[%s2934_s1 + $0x2b8] sm:$0xff]  }
  0x2c   :  { %2005 = vmatpush3.bf16.msra.mxu0 %v2237_v60  ;;  %v390_v60 = vcombine.high %v380_v56, %v380_v56 }
  0x2d   :  { %2006 = vmatprep.subr.bf16.mxu0 %v2239_v62  ;;  %2027 = vmatpush3.bf16.msra.mxu1 %v2238_v61  ;;  %v366_v61 = vrot.slane %v350_v48, %v2527_v41  ;;  %v2291_v62 = vld [vmem:[%s2934_s1 + $0x340] sm:$0xff]  }
  0x2e   :  { %2028 = vmatprep.subr.bf16.mxu1 %v2240_v63  ;;  %v2292_v63 = vld [vmem:[%s2934_s1 + $0x3c0] sm:$0xff]  }
  0x30   :  { %2007 = vmatpush3.bf16.msra.mxu0 %v2241_v0  ;;  %v387_v0 = vrot.slane %v359_v57, %v2527_v41 }
  0x31   :  { %2008 = vmatprep.subr.bf16.mxu0 %v2243_v2  ;;  %2029 = vmatpush3.bf16.msra.mxu1 %v2242_v1  ;;  %v2293_v1 = vld [vmem:[%s2934_s1 + $0x300] sm:$0xff]  }
  0x32   :  { %2030 = vmatprep.subr.bf16.mxu1 %v2244_v3  ;;  %v2294_v2 = vld [vmem:[%s2934_s1 + $0x380] sm:$0xff]   ;;  %v388_v3 = vcombine.high %v366_v61, %v366_v61 }
  0x34   :  { %2009 = vmatpush3.bf16.msra.mxu0 %v2245_v4  ;;  %v2295_v4 = vld [vmem:[%s2934_s1 + $0x348] sm:$0xff]  }
  0x35   :  { %2010 = vmatprep.subr.bf16.mxu0 %v2247_v6  ;;  %2031 = vmatpush3.bf16.msra.mxu1 %v2246_v5  ;;  %v2296_v5 = vld [vmem:[%s2934_s1 + $0x3c8] sm:$0xff]   ;;  %v391_v6 = vcombine.high %v387_v0, %v387_v0 }
  0x36   :  { %2032 = vmatprep.subr.bf16.mxu1 %v2248_v7  ;;  %v2297_v7 = vld [vmem:[%s2934_s1 + $0x308] sm:$0xff]  }
  0x38   :  { %2011 = vmatpush3.bf16.msra.mxu0 %v2249_v8  ;;  %v2298_v8 = vld [vmem:[%s2934_s1 + $0x388] sm:$0xff]  }
  0x39   :  { %2012 = vmatprep.subr.bf16.mxu0 %v2251_v10  ;;  %2033 = vmatpush3.bf16.msra.mxu1 %v2250_v9  ;;  %v2299_v9 = vld [vmem:[%s2934_s1 + $0x350] sm:$0xff]  }
  0x3a   :  { %2034 = vmatprep.subr.bf16.mxu1 %v2252_v11  ;;  %v2300_v10 = vld [vmem:[%s2934_s1 + $0x3d0] sm:$0xff]  }
  0x3b   :  { %v2301_v11 = vld [vmem:[%s2934_s1 + $0x310] sm:$0xff]  }
  0x3c   :  { %2013 = vmatpush3.bf16.msra.mxu0 %v2253_v12  ;;  %v2302_v12 = vld [vmem:[%s2934_s1 + $0x390] sm:$0xff]  }
  0x3d   :  { %2014 = vmatprep.subr.bf16.mxu0 %v2255_v14  ;;  %2035 = vmatpush3.bf16.msra.mxu1 %v2254_v13  ;;  %v2303_v13 = vld [vmem:[%s2934_s1 + $0x358] sm:$0xff]  }
  0x3e   :  { %2036 = vmatprep.subr.bf16.mxu1 %v2256_v15  ;;  %v2304_v14 = vld [vmem:[%s2934_s1 + $0x3d8] sm:$0xff]  }
  0x3f   :  { %v2305_v15 = vld [vmem:[%s2934_s1 + $0x318] sm:$0xff]  }
  0x40   :  { %2015 = vmatpush3.bf16.msra.mxu0 %v2257_v16  ;;  %v2306_v16 = vld [vmem:[%s2934_s1 + $0x398] sm:$0xff]  }
  0x41   :  { %2044 = vmatprep.subr.bf16.mxu0 %v2259_v19  ;;  %2037 = vmatpush3.bf16.msra.mxu1 %v2258_v17  ;;  %v2307_v17 = vld [vmem:[%s2934_s1 + $0x360] sm:$0xff]  }
  0x42   :  { %2066 = vmatprep.subr.bf16.mxu1 %v2260_v20  ;;  %v2309_v19 = vld [vmem:[%s2934_s1 + $0x320] sm:$0xff]  }
  0x43   :  { %1289 = vmatmul.mubr.bf16.vlgmr.msra.gmra.mrb[4].mxu0 %v324_v18  ;;  %v2308_v18 = vld [vmem:[%s2934_s1 + $0x3e0] sm:$0xff]  }
  0x44   :  { %2045 = vmatpush3.bf16.msra.mxu0 %v2261_v21  ;;  %1329 = vmatmul.mubr.bf16.vlgmr.msra.gmra.mrb[4].mxu1 %v340_v23  ;;  %v2310_v20 = vld [vmem:[%s2934_s1 + $0x3a0] sm:$0xff]   ;;  %v2311_v21 = vld [vmem:[%s2934_s1 + $0x368] sm:$0xff]  }
  0x45   :  { %2046 = vmatprep.subr.bf16.mxu0 %v2263_v24  ;;  %2067 = vmatpush3.bf16.msra.mxu1 %v2262_v22  ;;  %v2312_v22 = vld [vmem:[%s2934_s1 + $0x3e8] sm:$0xff]  }
  0x46   :  { %2068 = vmatprep.subr.bf16.mxu1 %v2264_v25  ;;  %1368 = vmatprep.mubr.bf16.mxu0 %v380_v56  ;;  %v2313_v23 = vld [vmem:[%s2934_s1 + $0x328] sm:$0xff]   ;;  %v2315_v25 = vld [vmem:[%s2934_s1 + $0x370] sm:$0xff]  }
  0x47   :  { %1408 = vmatprep.mubr.bf16.mxu1 %v390_v60  ;;  %v2314_v24 = vld [vmem:[%s2934_s1 + $0x3a8] sm:$0xff]  }
  0x48   :  { %2047 = vmatpush3.bf16.msra.mxu0 %v2265_v26  ;;  %v2316_v26 = vld [vmem:[%s2934_s1 + $0x3f0] sm:$0xff]  }
  0x49   :  { %2048 = vmatprep.subr.bf16.mxu0 %v2267_v28  ;;  %2069 = vmatpush3.bf16.msra.mxu1 %v2266_v27  ;;  %v2317_v27 = vld [vmem:[%s2934_s1 + $0x330] sm:$0xff]   ;;  %v2319_v28 = vld [vmem:[%s2934_s1 + $0x378] sm:$0xff]  }
  0x4a   :  { %2070 = vmatprep.subr.bf16.mxu1 %v2268_v29  ;;  %v2318_v29 = vld [vmem:[%s2934_s1 + $0x3b0] sm:$0xff]  }
  0x4c   :  { %2049 = vmatpush3.bf16.msra.mxu0 %v2269_v30  ;;  %v2320_v30 = vld [vmem:[%s2934_s1 + $0x3f8] sm:$0xff]  }
  0x4d   :  { %2050 = vmatprep.subr.bf16.mxu0 %v2271_v32  ;;  %2071 = vmatpush3.bf16.msra.mxu1 %v2270_v31  ;;  %v2321_v31 = vld [vmem:[%s2934_s1 + $0x338] sm:$0xff]  }
  0x4e   :  { %2072 = vmatprep.subr.bf16.mxu1 %v2272_v33  ;;  %v2322_v32 = vld [vmem:[%s2934_s1 + $0x3b8] sm:$0xff]   ;;  %v373_v33 = vrot.slane %v2719_v53, %v2527_v41 }
  0x50   :  { %2051 = vmatpush3.bf16.msra.mxu0 %v2273_v34 }
  0x51   :  { %2052 = vmatprep.subr.bf16.mxu0 %v2275_v36  ;;  %2073 = vmatpush3.bf16.msra.mxu1 %v2274_v35 }
  0x52   :  { %2074 = vmatprep.subr.bf16.mxu1 %v2276_v37 }
  0x54   :  { %2053 = vmatpush3.bf16.msra.mxu0 %v2277_v38 }
  0x55   :  { %2054 = vmatprep.subr.bf16.mxu0 %v2279_v40  ;;  %2075 = vmatpush3.bf16.msra.mxu1 %v2278_v39 }
  0x56   :  { %2076 = vmatprep.subr.bf16.mxu1 %v2280_v42 }
  0x58   :  { %2055 = vmatpush3.bf16.msra.mxu0 %v2281_v43 }
  0x59   :  { %2056 = vmatprep.subr.bf16.mxu0 %v2283_v45  ;;  %2077 = vmatpush3.bf16.msra.mxu1 %v2282_v44 }
  0x5a   :  { %2078 = vmatprep.subr.bf16.mxu1 %v2284_v47 }
  0x5c   :  { %2057 = vmatpush3.bf16.msra.mxu0 %v2285_v50 }
  0x5d   :  { %2058 = vmatprep.subr.bf16.mxu0 %v2287_v54  ;;  %2079 = vmatpush3.bf16.msra.mxu1 %v2286_v51 }
  0x5e   :  { %2080 = vmatprep.subr.bf16.mxu1 %v2288_v55 }
  0x60   :  { %2059 = vmatpush3.bf16.msra.mxu0 %v2289_v58 }
  0x61   :  { %2088 = vmatprep.subr.bf16.mxu0 %v2291_v62  ;;  %2081 = vmatpush3.bf16.msra.mxu1 %v2290_v59 }
  0x62   :  { %2110 = vmatprep.subr.bf16.mxu1 %v2292_v63 }
  0x63   :  { %1369 = vmatmul.mubr.bf16.vlgmr.msra.gmra.mrb[8].mxu0 %v366_v61 }
  0x64   :  { %2089 = vmatpush3.bf16.msra.mxu0 %v2293_v1  ;;  %1448 = vmatprep.mubr.bf16.mxu0 %v387_v0 }
  0x65   :  { %1409 = vmatmul.mubr.bf16.vlgmr.msra.gmra.mrb[8].mxu1 %v388_v3  ;;  %2090 = vmatprep.subr.bf16.mxu0 %v2295_v4 }
  0x66   :  { %2111 = vmatpush3.bf16.msra.mxu1 %v2294_v2  ;;  %1488 = vmatprep.mubr.bf16.mxu1 %v391_v6 }
  0x67   :  { %2112 = vmatprep.subr.bf16.mxu1 %v2296_v5 }
  0x68   :  { %2091 = vmatpush3.bf16.msra.mxu0 %v2297_v7 }
  0x69   :  { %2092 = vmatprep.subr.bf16.mxu0 %v2299_v9 }
  0x6a   :  { %2113 = vmatpush3.bf16.msra.mxu1 %v2298_v8 }
  0x6b   :  { %2114 = vmatprep.subr.bf16.mxu1 %v2300_v10 }
  0x6c   :  { %2093 = vmatpush3.bf16.msra.mxu0 %v2301_v11 }
  0x6d   :  { %2094 = vmatprep.subr.bf16.mxu0 %v2303_v13 }
  0x6e   :  { %2115 = vmatpush3.bf16.msra.mxu1 %v2302_v12 }
  0x6f   :  { %2116 = vmatprep.subr.bf16.mxu1 %v2304_v14 }
  0x70   :  { %2095 = vmatpush3.bf16.msra.mxu0 %v2305_v15 }
  0x71   :  { %2096 = vmatprep.subr.bf16.mxu0 %v2307_v17 }
  0x72   :  { %2117 = vmatpush3.bf16.msra.mxu1 %v2306_v16 }
  0x73   :  { %2118 = vmatprep.subr.bf16.mxu1 %v2308_v18 }
  0x74   :  { %2097 = vmatpush3.bf16.msra.mxu0 %v2309_v19 }
  0x75   :  { %2098 = vmatprep.subr.bf16.mxu0 %v2311_v21 }
  0x76   :  { %2119 = vmatpush3.bf16.msra.mxu1 %v2310_v20 }
  0x77   :  { %2120 = vmatprep.subr.bf16.mxu1 %v2312_v22 }
  0x78   :  { %2099 = vmatpush3.bf16.msra.mxu0 %v2313_v23 }
  0x79   :  { %2100 = vmatprep.subr.bf16.mxu0 %v2315_v25 }
  0x7a   :  { %2121 = vmatpush3.bf16.msra.mxu1 %v2314_v24 }
  0x7b   :  { %2122 = vmatprep.subr.bf16.mxu1 %v2316_v26 }
  0x7c   :  { %2101 = vmatpush3.bf16.msra.mxu0 %v2317_v27 }
  0x7d   :  { %2102 = vmatprep.subr.bf16.mxu0 %v2319_v28 }
  0x7e   :  { %2123 = vmatpush3.bf16.msra.mxu1 %v2318_v29 }
  0x7f   :  { %2124 = vmatprep.subr.bf16.mxu1 %v2320_v30 }
  0x80   :  { %2103 = vmatpush3.bf16.msra.mxu0 %v2321_v31 }
  0x81   :  { %14 = vsyncpa [#allocation3], 0  ;;  %v389_v34 = vcombine.high %v373_v33, %v373_v33  ;;  %v2324_v40 = vld [vmem:[%s2937_s4] sm:$0xff]   ;;  %v2369_v41 = vmov 0.0   ;;  %v2325_v48 = vld [vmem:[%s2937_s4 + $0x8] sm:$0xff]   ;;  %vm2370_vm0 = vmmov 0  }
  0x82   :  { %2125 = vmatpush3.bf16.msra.mxu1 %v2322_v32  ;;  %2150 = vmatprep.subr.bf16.mxu0 %v2369_v41  ;;  %v2326_v49 = vld [vmem:[%s2937_s4 + $0x10] sm:$0xff]   ;;  %v2327_v50 = vld [vmem:[%s2937_s4 + $0x18] sm:$0xff]   ;;  %v2328_v51 = vld [vmem:[%s2937_s4 + $0x20] sm:$0xff]   ;;  %vm1498_vm1 = vcmask 1041408   ;;  %s2371_s27 = smov [#allocation2]   ;;  %vm1791_vm2 = vcmask 517120  }
  0x83   :  { %1449 = vmatmul.mubr.bf16.vlgmr.msra.gmra.mrb[12].mxu0 %v373_v33  ;;  %2170 = vmatprep.subr.bf16.mxu1 %v2369_v41  ;;  %v2329_v52 = vld [vmem:[%s2937_s4 + $0x28] sm:$0xff]   ;;  %v2330_v53 = vld [vmem:[%s2937_s4 + $0x30] sm:$0xff]   ;;  %v2331_v54 = vld [vmem:[%s2937_s4 + $0x38] sm:$0xff]   ;;  %s1799_s4 = sshll.u32 %s2371_s27, 4  ;;  %s1800_s4 = int_to_ptr.vmem [resolvable:$true] %s1799_s4 }
  0x84   :  { %2151 = vmatpush3.bf16.msra.mxu0 %v2324_v40  ;;  %2166 = vmatprep.mubr.msk.bf16.mxu0 %vm2370_vm0, %v2369_v41  ;;  %p2349_p1 = scmp.lt.s32.totalorder %s1800_s4, %s1800_s4 }
  0x85   :  { %1489 = vmatmul.mubr.bf16.vlgmr.msra.gmra.mrb[12].mxu1 %v389_v34  ;;  %2152 = vmatprep.subr.bf16.mxu0 %v2369_v41 }
  0x86   :  { %2186 = vmatprep.mubr.msk.bf16.mxu1 %vm2370_vm0, %v2369_v41 }
  0x88   :  { %2153 = vmatpush3.bf16.msra.mxu0 %v2325_v48  ;;  %v1935_v48 = vld [vmem:[%s2935_s2] ss:$0 sm:$0xff] }
  0x89   :  { %2154 = vmatprep.subr.bf16.mxu0 %v2369_v41 }
  0x8c   :  { %2155 = vmatpush3.bf16.msra.mxu0 %v2326_v49 }
  0x8d   :  { %2156 = vmatprep.subr.bf16.mxu0 %v2369_v41 }
  0x90   :  { %2157 = vmatpush3.bf16.msra.mxu0 %v2327_v50  ;;  %v1936_v50 = vld [vmem:[%s2936_s3] ss:$0 sm:$0xff] }
  0x91   :  { %2158 = vmatprep.subr.bf16.mxu0 %v2369_v41 }
  0x94   :  { %2159 = vmatpush3.bf16.msra.mxu0 %v2328_v51 }
  0x95   :  { %2160 = vmatprep.subr.bf16.mxu0 %v2369_v41 }
  0x98   :  { %2161 = vmatpush3.bf16.msra.mxu0 %v2329_v52 }
  0x99   :  { %2162 = vmatprep.subr.bf16.mxu0 %v2369_v41 }
  0x9c   :  { %2163 = vmatpush3.bf16.msra.mxu0 %v2330_v53 }
  0x9d   :  { %2164 = vmatprep.subr.bf16.mxu0 %v2369_v41 }
  0xa0   :  { %2165 = vmatpush3.bf16.msra.mxu0 %v2331_v54 }
  0xf6   :  { %v1972_v35 = vpop.f32.mrb[0].mxu0 }
  0xf7   :  { %v1973_v36 = vpop.f32.mrb[1].mxu0  ;;  %v1994_v37 = vpop.f32.mrb[0].mxu1 }
  0xf8   :  { %v1974_v38 = vadd.f32 %v1973_v36, %v1972_v35  ;;  %v1975_v39 = vpop.f32.mrb[2].mxu0  ;;  %v1995_v42 = vpop.f32.mrb[1].mxu1 }
  0xf9   :  { %v1976_v43 = vpop.f32.mrb[3].mxu0  ;;  %v1996_v44 = vadd.f32 %v1995_v42, %v1994_v37  ;;  %v1997_v45 = vpop.f32.mrb[2].mxu1 }
  0xfa   :  { %v1998_v46 = vpop.f32.mrb[3].mxu1 }
  0xfb   :  { %v1251_v47 = vadd.f32 %v1996_v44, %v1974_v38 }
 0x116   :  { %v2016_v55 = vpop.f32.mrb[4].mxu0 }
 0x117   :  { %v2017_v56 = vpop.f32.mrb[5].mxu0  ;;  %v2038_v57 = vpop.f32.mrb[4].mxu1 }
 0x118   :  { %v2018_v58 = vadd.f32 %v2017_v56, %v2016_v55  ;;  %v2019_v59 = vpop.f32.mrb[6].mxu0  ;;  %v2039_v60 = vpop.f32.mrb[5].mxu1  ;;  %v2332_v55 = vld [vmem:[%s2940_s7] sm:$0xff]   ;;  %v2333_v56 = vld [vmem:[%s2940_s7 + $0x8] sm:$0xff]  }
 0x119   :  { %v2020_v61 = vpop.f32.mrb[7].mxu0  ;;  %v2040_v63 = vadd.f32 %v2039_v60, %v2038_v57  ;;  %v2041_v0 = vpop.f32.mrb[6].mxu1  ;;  %2171 = vmatpush3.bf16.msra.mxu1 %v2332_v55  ;;  %v2334_v57 = vld [vmem:[%s2940_s7 + $0x10] sm:$0xff]   ;;  %v2336_v59 = vld [vmem:[%s2940_s7 + $0x20] sm:$0xff]   ;;  %v2337_v60 = vld [vmem:[%s2940_s7 + $0x28] sm:$0xff]  }
 0x11a   :  { %v1291_v62 = vadd.f32 %v2018_v58, %v1251_v47  ;;  %v2042_v1 = vpop.f32.mrb[7].mxu1  ;;  %2172 = vmatprep.subr.bf16.mxu1 %v2369_v41  ;;  %v2335_v58 = vld [vmem:[%s2940_s7 + $0x18] sm:$0xff]   ;;  %v2338_v61 = vld [vmem:[%s2940_s7 + $0x30] sm:$0xff]  }
 0x11c   :  { %v1331_v2 = vadd.f32 %v2040_v63, %v1291_v62  ;;  %v2339_v62 = vld [vmem:[%s2940_s7 + $0x38] sm:$0xff]  }
 0x11d   :  { %2173 = vmatpush3.bf16.msra.mxu1 %v2333_v56 }
 0x11e   :  { %2174 = vmatprep.subr.bf16.mxu1 %v2369_v41 }
 0x121   :  { %2175 = vmatpush3.bf16.msra.mxu1 %v2334_v57 }
 0x122   :  { %2176 = vmatprep.subr.bf16.mxu1 %v2369_v41 }
 0x125   :  { %2177 = vmatpush3.bf16.msra.mxu1 %v2335_v58 }
 0x126   :  { %2178 = vmatprep.subr.bf16.mxu1 %v2369_v41 }
 0x129   :  { %2179 = vmatpush3.bf16.msra.mxu1 %v2336_v59 }
 0x12a   :  { %2180 = vmatprep.subr.bf16.mxu1 %v2369_v41 }
 0x12d   :  { %2181 = vmatpush3.bf16.msra.mxu1 %v2337_v60 }
 0x12e   :  { %2182 = vmatprep.subr.bf16.mxu1 %v2369_v41 }
 0x131   :  { %2183 = vmatpush3.bf16.msra.mxu1 %v2338_v61 }
 0x132   :  { %2184 = vmatprep.subr.bf16.mxu1 %v2369_v41 }
 0x135   :  { %2185 = vmatpush3.bf16.msra.mxu1 %v2339_v62 }
 0x136   :  { %v2060_v3 = vpop.f32.mrb[8].mxu0 }
 0x137   :  { %v2061_v4 = vpop.f32.mrb[9].mxu0 }
 0x138   :  { %v2082_v5 = vpop.f32.mrb[8].mxu1  ;;  %v2062_v6 = vadd.f32 %v2061_v4, %v2060_v3  ;;  %v2063_v7 = vpop.f32.mrb[10].mxu0 }
 0x139   :  { %v2083_v8 = vpop.f32.mrb[9].mxu1  ;;  %v2064_v9 = vpop.f32.mrb[11].mxu0 }
 0x13a   :  { %v1371_v10 = vadd.f32 %v2062_v6, %v1331_v2  ;;  %v2084_v11 = vadd.f32 %v2083_v8, %v2082_v5  ;;  %v2085_v12 = vpop.f32.mrb[10].mxu1 }
 0x13b   :  { %v2086_v13 = vpop.f32.mrb[11].mxu1 }
 0x13c   :  { %v1411_v14 = vadd.f32 %v2084_v11, %v1371_v10 }
 0x156   :  { %v2104_v15 = vpop.f32.mrb[12].mxu0 }
 0x157   :  { %v2105_v16 = vpop.f32.mrb[13].mxu0 }
 0x158   :  { %v2126_v17 = vpop.f32.mrb[12].mxu1  ;;  %v2106_v18 = vadd.f32 %v2105_v16, %v2104_v15  ;;  %v2107_v19 = vpop.f32.mrb[14].mxu0 }
 0x159   :  { %v2127_v20 = vpop.f32.mrb[13].mxu1  ;;  %v2108_v21 = vpop.f32.mrb[15].mxu0 }
 0x15a   :  { %v1451_v22 = vadd.f32 %v2106_v18, %v1411_v14  ;;  %v2128_v23 = vadd.f32 %v2127_v20, %v2126_v17  ;;  %v2129_v24 = vpop.f32.mrb[14].mxu1 }
 0x15b   :  { %v2130_v25 = vpop.f32.mrb[15].mxu1  ;;  %v1946_v24 = vld [vmem:[%s2939_s6] ss:$0 sm:$0xff] }
 0x15c   :  { %v1491_v26 = vadd.f32 %v2128_v23, %v1451_v22  ;;  %v1945_v22 = vld [vmem:[%s2938_s5] ss:$0 sm:$0xff]  ;;  %s2344_s5 = scalar_lea.vmem %s1800_s4, 32 }
 0x15d   :  { %p2345_p0 = scmp.ne.s32.totalorder %s1800_s4, %s2344_s5  ;;  %p2350_p2 = scmp.lt.s32.totalorder %s2344_s5, %s2344_s5 }
 0x15e   :  { %v1499_v27 = vsel %vm1498_vm1, %v1491_v26, 0.0 }
 0x15f   :  { %v1500_v28 = vrot.slane %v1499_v27, 4  ;;  %p2351_p3 = por %p2350_p2, %p2349_p1 }
 0x161   :  { %v1501_v29 = vadd.f32 %v1500_v28, %v1499_v27  ;;  %p2352_p4 = pnand %p2351_p3, %p2345_p0 }
 0x163   :  { %v1502_v30 = vrot.slane %v1501_v29, 2 }
 0x165   :  { %v1503_v31 = vadd.f32 %v1502_v30, %v1501_v29  ;;  %v1947_v29 = vld [vmem:[%s2941_s8] ss:$0 sm:$0xff] }
 0x167   :  { %v1504_v32 = vrot.slane %v1503_v31, 1 }
 0x169   :  { %v1505_v33 = vadd.f32 %v1504_v32, %v1503_v31 }
 0x16b   :  { %v1507_v34 = vmul.f32 0.5, %v1505_v33 }
 0x16d   :  { %v1508_v35 = vsub.f32 %v1491_v26, %v1507_v34 }
 0x16f   :  { %v1509_v36 = vmul.f32 %v1508_v35, %v1508_v35 }
 0x171   :  { %v1510_v37 = vsel %vm1498_vm1, %v1509_v36, 0.0 }
 0x172   :  { %v1511_v38 = vrot.slane %v1510_v37, 4 }
 0x174   :  { %v1512_v39 = vadd.f32 %v1511_v38, %v1510_v37 }
 0x176   :  { %v1513_v40 = vrot.slane %v1512_v39, 2 }
 0x178   :  { %v1514_v42 = vadd.f32 %v1513_v40, %v1512_v39 }
 0x17a   :  { %v1515_v43 = vrot.slane %v1514_v42, 1 }
 0x17c   :  { %v1516_v44 = vadd.f32 %v1515_v43, %v1514_v42 }
 0x17e   :  { %v1517_v45 = vmul.f32 0.5, %v1516_v44 }
 0x180   :  { %v1518_v46 = vadd.f32 1e-05, %v1517_v45 }
 0x182   :  { %2340 = vrsqrt.f32 %v1518_v46 }
 0x18c   :  { %v2341_v47 = vpop.eup %2340 }
 0x18d   :  { %v1520_v49 = vmul.f32 %v2341_v47, %v1508_v35 }
 0x18f   :  { %v1527_v51 = vmul.f32 %v1935_v48, %v1520_v49 }
 0x191   :  { %v1534_v52 = vadd.f32 %v1936_v50, %v1527_v51 }
 0x193   :  { %v1535_v53 = vmax.f32 %v1534_v52, 0.0 }
 0x195   :  { %v1536_v54 = vpack.c.bf16 %v1535_v53, %v1535_v53 }
 0x197   :  { %2167 = vmatmul.mubr.bf16.vlgmr.msra.gmra.mrb[16].mxu0 %v1536_v54 }
 0x26a   :  { %v1635_v63 = vpop.f32.mrb[16].mxu0 }
 0x26b   :  { %v1643_v0 = vsel %vm1498_vm1, %v1635_v63, 0.0  ;;  %v2168_v1 = vpop.f32.mrb[17].mxu0 }
 0x26c   :  { %v1644_v2 = vrot.slane %v1643_v0, 4  ;;  %v1638_v3 = vpop.f32.mrb[18].mxu0 }
 0x26d   :  { %v2169_v4 = vpop.f32.mrb[19].mxu0 }
 0x26e   :  { %v1645_v5 = vadd.f32 %v1644_v2, %v1643_v0 }
 0x270   :  { %v1646_v6 = vrot.slane %v1645_v5, 2 }
 0x272   :  { %v1647_v7 = vadd.f32 %v1646_v6, %v1645_v5 }
 0x274   :  { %v1648_v8 = vrot.slane %v1647_v7, 1 }
 0x276   :  { %v1649_v9 = vadd.f32 %v1648_v8, %v1647_v7 }
 0x278   :  { %v1650_v10 = vmul.f32 0.5, %v1649_v9 }
 0x27a   :  { %v1651_v11 = vsub.f32 %v1635_v63, %v1650_v10 }
 0x27c   :  { %v1652_v12 = vmul.f32 %v1651_v11, %v1651_v11 }
 0x27e   :  { %v1653_v13 = vsel %vm1498_vm1, %v1652_v12, 0.0 }
 0x27f   :  { %v1654_v14 = vrot.slane %v1653_v13, 4 }
 0x281   :  { %v1655_v41 = vadd.f32 %v1654_v14, %v1653_v13 }
 0x283   :  { %v1656_v15 = vrot.slane %v1655_v41, 2 }
 0x285   :  { %v1657_v16 = vadd.f32 %v1656_v15, %v1655_v41 }
 0x287   :  { %v1658_v17 = vrot.slane %v1657_v16, 1 }
 0x289   :  { %v1659_v18 = vadd.f32 %v1658_v17, %v1657_v16 }
 0x28b   :  { %v1660_v19 = vmul.f32 0.5, %v1659_v18 }
 0x28d   :  { %v1661_v20 = vadd.f32 1e-05, %v1660_v19 }
 0x28f   :  { %2342 = vrsqrt.f32 %v1661_v20 }
 0x299   :  { %v2343_v21 = vpop.eup %2342 }
 0x29a   :  { %v1663_v23 = vmul.f32 %v2343_v21, %v1651_v11 }
 0x29c   :  { %v1670_v25 = vmul.f32 %v1945_v22, %v1663_v23 }
 0x29e   :  { %v1677_v26 = vadd.f32 %v1946_v24, %v1670_v25 }
 0x2a0   :  { %v1678_v27 = vmax.f32 %v1677_v26, 0.0 }
 0x2a2   :  { %v1679_v28 = vpack.c.bf16 %v1678_v27, %v1678_v27 }
 0x2a4   :  { %2187 = vmatmul.mubr.bf16.vlgmr.msra.gmra.mrb[16].mxu1 %v1679_v28 }
 0x377   :  { %v1785_v30 = vpop.f32.mrb[16].mxu1 }
 0x378   :  { %v1786_v31 = vadd.f32 %v1947_v29, %v1785_v30  ;;  %v2188_v32 = vpop.f32.mrb[17].mxu1 }
 0x379   :  { %v1788_v33 = vpop.f32.mrb[18].mxu1 }
 0x37a   :  { %v2189_v34 = vpop.f32.mrb[19].mxu1  ;;  %1792 = vst.msk [vmem:[#allocation2] sm:$0x3] %vm1791_vm2, %v1786_v31 }
 0x37b   :  { %2355 = shalt.err (!%p2352_p4)
}
 0x37c   :  { %s2356_s8 = scalar_lea.hbm %s2942_s9, 32 }
 0x37d   :  { %p2357_p5 = scmp.ne.s32.totalorder %s2942_s9, %s2356_s8  ;;  %p2360_p6 = scmp.lt.u32.totalorder %s2356_s8, %s2942_s9 }
 0x37f   :  { %p2362_p7 = pnand %p2360_p6, %p2357_p5 }
 0x381   :  { %2365 = shalt.err (!%p2362_p7)
}
 0x382   :  { %1802 = dma.vmem_to_hbm [thread:$0]  %s1800_s4, 32, %s2942_s9, [#allocation3]  }
 0x383   :  { %2366 = dma.done.wait [#allocation3], 32  }
 0x384   :  { %2367 = vsyncadd [#allocation3], 4294967264 }
 0x385   :  { %1806 = vsyncpa [#allocation3], 1 }

</bundles_post_ra>
